<compile_context>
chip_gen: v6e
topology: v6e:2x2x1
jax: 0.10.0
libtpu: 0.0.40
codegen_flags: <defaults>
</compile_context>

<pallas_src>
import jax
import jax.numpy as jnp
from jax.experimental import pallas as pl
from jax.experimental.pallas import tpu as pltpu


def _round_up(x: int, m: int) -> int:
    return ((x + m - 1) // m) * m


# --------------------------------------------------------------------------
# Kernel
# --------------------------------------------------------------------------
def _embed_pos_kernel(ids_ref, emb_ref, pos_ref, out_ref):
    """One (row-tile, vocab-tile) grid step.

    ids_ref: (TILE_ROWS, 1) int32   token ids for this row tile (clamped to [0, V))
    emb_ref: (TILE_V, E)            vocab tile of the embedding table
    pos_ref: (POS_ROWS, E) f32      positional-encoding rows; POS_ROWS divides TILE_ROWS
    out_ref: (TILE_ROWS, E) f32     resident across the vocab (reduction) axis
    """
    v = pl.program_id(1)
    tile_rows = out_ref.shape[0]
    tile_v = emb_ref.shape[0]
    pos_rows = pos_ref.shape[0]
    reps = tile_rows // pos_rows  # static

    # Initialize the resident output tile with the positional encoding on the
    # first vocab tile; later vocab tiles only accumulate the gather result.
    @pl.when(v == 0)
    def _init():
        if reps == 1:
            out_ref[...] = pos_ref[...]
        else:
            pos = pos_ref[...]
            for j in range(reps):  # static unroll; starts are multiples of 8
                out_ref[pl.ds(j * pos_rows, pos_rows), :] = pos

    # One-hot gather on the MXU: rows along sublanes, vocab along lanes.
    # ids arrive as a (TILE_ROWS, 1) column, so the compare is a cheap lane
    # broadcast (no sublane<->lane relayout needed).
    local_ids = ids_ref[...] - v * tile_v                             # (TILE_ROWS, 1)
    lane_ids = jax.lax.broadcasted_iota(jnp.int32, (tile_rows, tile_v), 1)
    onehot = (local_ids == lane_ids).astype(emb_ref.dtype)            # bf16 table -> bf16 MXU
    out_ref[...] += jnp.dot(onehot, emb_ref[...],
                            preferred_element_type=jnp.float32)


# --------------------------------------------------------------------------
# Tiling heuristics
# --------------------------------------------------------------------------
def _vmem_caps():
    """(per-step working-set budget, compiler vmem limit) for this chip."""
    try:
        cap = int(pltpu.get_tpu_info().vmem_capacity_bytes)
    except Exception:
        cap = 64 << 20  # assume the smallest generation (v7x) if unknown
    if cap <= (64 << 20):          # v7x-class: 64 MiB physical VMEM
        return 28 << 20, 48 << 20
    return 48 << 20, 96 << 20      # v5e/v6e-class: 128 MiB physical VMEM


def _choose_vocab_tiling(vocab: int, emb_dim: int, itemsize: int,
                         tile_rows: int, budget_bytes: int):
    """Return (tile_v, num_v); prefer the whole (128-padded) table resident."""
    v_res = _round_up(vocab, 128)

    def step_bytes(tv: int) -> int:
        table = 2 * tv * emb_dim * itemsize          # (double-buffered) table tile
        out_tile = 2 * tile_rows * emb_dim * 4       # resident f32 output tile
        pos_tile = 2 * tile_rows * emb_dim * 4       # upper bound on PE tile
        ids_tile = 2 * tile_rows * 128 * 4           # lane-padded ids column
        onehot = tile_rows * tv * 4                  # in-kernel intermediate
        return table + out_tile + pos_tile + ids_tile + onehot

    # Fully-resident table: constant block index -> DMA'd exactly once per core.
    if step_bytes(v_res) <= budget_bytes:
        return v_res, 1

    # Otherwise stream the vocab; keep tile_v a multiple of 128, floor at 128.
    tile_v = 4096
    while tile_v > 128 and step_bytes(tile_v) > budget_bytes:
        tile_v //= 2
    tile_v = max(128, tile_v)
    num_v = (vocab + tile_v - 1) // tile_v
    return tile_v, num_v


# --------------------------------------------------------------------------
# Positional-encoding table (same math as the PyTorch module)
# --------------------------------------------------------------------------
def build_positional_encoding(context_size: int, embedding_size: int) -> jnp.ndarray:
    positions = jnp.arange(context_size, dtype=jnp.float32)         # (S,)
    dimensions = jnp.arange(embedding_size, dtype=jnp.float32)      # (E,)
    exponent = (dimensions // 2) * 2.0 / embedding_size
    divisor = jnp.power(10000.0, exponent)                          # (E,)
    angle_rates = positions[:, None] / divisor[None, :]             # (S, E)
    even_mask = (jnp.arange(embedding_size) % 2) == 0
    pos_encoding = jnp.where(even_mask[None, :],
                             jnp.sin(angle_rates),
                             jnp.cos(angle_rates))
    return pos_encoding.astype(jnp.float32)


# --------------------------------------------------------------------------
# Wrapper
# --------------------------------------------------------------------------
def model_forward(token_ids: jnp.ndarray,
                  emb_table: jnp.ndarray,
                  pos_encoding: jnp.ndarray) -> jnp.ndarray:
    """token_ids: (B, S) int -> (B, S, E) float32."""
    B, S = token_ids.shape
    V, E = emb_table.shape
    assert pos_encoding.shape == (S, E)

    budget, vmem_limit = _vmem_caps()
    R = B * S

    # ---------------- row (B*S) tiling + positional-encoding spec ----------
    if S % 8 == 0:
        # Cap the row tile so the per-step row working set stays inside budget.
        max_rows_by_vmem = max(8, (budget // 3) // (4 * max(E, 128)))
        target = max(8, min(512, max_rows_by_vmem))
        if S <= target:
            # tile_rows = k * S; PE block is the full (S, E) table, constant
            # block index -> stays resident in VMEM, replicated k x in-kernel.
            k = max(1, min(target // S, B))
            while k > 1 and (B % k != 0 or B // k < 2):
                k -= 1
            tile_rows = k * S
            pos_arg = pos_encoding.astype(jnp.float32)
            pos_spec = pl.BlockSpec((S, E), lambda r, v: (0, 0))
        else:
            # tile_rows divides S; PE block addressed by (row tile) mod (S/tile_rows).
            tile_rows = 8
            d = 8
            while d <= min(S, target):
                if S % d == 0:
                    tile_rows = d
                d += 8
            n_pos_blocks = S // tile_rows
            pos_arg = pos_encoding.astype(jnp.float32)
            pos_spec = pl.BlockSpec((tile_rows, E),
                                    lambda r, v: (r % n_pos_blocks, 0))
        R_pad = R  # both branches: tile_rows divides B*S exactly
    else:
        # Rare fallback (S not a multiple of 8): materialize per-row PE.
        tile_rows = min(256, _round_up(R, 8))
        R_pad = _round_up(R, tile_rows)
        pos_rows = jnp.broadcast_to(pos_encoding[None], (B, S, E)).reshape(R, E)
        pos_arg = jnp.pad(pos_rows.astype(jnp.float32), ((0, R_pad - R), (0, 0)))
        pos_spec = pl.BlockSpec((tile_rows, E), lambda r, v: (r, 0))

    # ---------------- token ids as a (R, 1) int32 column --------------------
    ids = jnp.clip(token_ids.reshape(-1).astype(jnp.int32), 0, V - 1)
    if R_pad != R:
        ids = jnp.pad(ids, (0, R_pad - R))          # padded rows -> token 0 (discarded)
    ids_col = ids.reshape(R_pad, 1)

    # ---------------- vocab tiling (resident if it fits the budget) ---------
    tile_v, num_v = _choose_vocab_tiling(V, E, emb_table.dtype.itemsize,
                                         tile_rows, budget)
    V_pad = tile_v * num_v
    table = emb_table if V_pad == V else jnp.pad(emb_table, ((0, V_pad - V), (0, 0)))

    num_r = R_pad // tile_rows

    out_flat = pl.pallas_call(
        _embed_pos_kernel,
        out_shape=jax.ShapeDtypeStruct((R_pad, E), jnp.float32),
        grid_spec=pltpu.PrefetchScalarGridSpec(
            num_scalar_prefetch=0,
            grid=(num_r, num_v),                                   # reduction axis last
            in_specs=[
                pl.BlockSpec((tile_rows, 1), lambda r, v: (r, 0)),  # token id column
                pl.BlockSpec((tile_v, E), lambda r, v: (v, 0)),     # table (constant if num_v==1)
                pos_spec,                                           # positional encoding
            ],
            out_specs=pl.BlockSpec((tile_rows, E), lambda r, v: (r, 0)),
        ),
        compiler_params=pltpu.CompilerParams(
            dimension_semantics=("parallel", "arbitrary"),
            vmem_limit_bytes=vmem_limit,
        ),
    )(ids_col, table, pos_arg)

    return out_flat[:R].reshape(B, S, E)


if __name__ == "__main__":
    # Small, deterministic shapes consistent with the module's forward.
    vocab_size = 1000
    embedding_size = 128
    context_size = 128
    batch_size = 4          # B*S = 512 -> 2 parallel row tiles of 256

    key = jax.random.PRNGKey(0)
    k_emb, k_ids = jax.random.split(key)

    # Deterministic parameter init (standard-normal table, like nn.Embedding).
    emb_table = jax.random.normal(k_emb, (vocab_size, embedding_size), dtype=jnp.float32)
    pos_encoding = build_positional_encoding(context_size, embedding_size)

    token_ids = jax.random.randint(k_ids, (batch_size, context_size), 0, vocab_size,
                                   dtype=jnp.int32)

    out = model_forward(token_ids, emb_table, pos_encoding)
    out = jax.block_until_ready(out)

    # Reference check in plain JAX.
    ref = emb_table[token_ids] + pos_encoding[None, :, :]
    assert out.shape == (batch_size, context_size, embedding_size)
    assert jnp.allclose(out, ref, atol=1e-4, rtol=1e-4)

    print("KERNEL_OK")
</pallas_src>

<mosaic_0001>
module attributes {stable_mosaic.version = 11 : i64} {
  func.func @_embed_pos_kernel(%arg0: i32, %arg1: i32, %arg2: memref<256x1xi32, #tpu.memory_space<vmem>>, %arg3: memref<1024x128xf32, #tpu.memory_space<vmem>>, %arg4: memref<128x128xf32, #tpu.memory_space<vmem>>, %arg5: memref<256x128xf32, #tpu.memory_space<vmem>>) attributes {dimension_semantics = [#tpu.dimension_semantics<parallel>, #tpu.dimension_semantics<arbitrary>], iteration_bounds = array<i64: 2, 1>, scalar_prefetch = 0 : i64, scratch_operands = 0 : i64, tpu.core_type = #tpu.core_type<tc>, window_params = [{transform_indices = @transform_0, window_bounds = array<i64: 256, 1>}, {transform_indices = @transform_1, window_bounds = array<i64: 1024, 128>}, {pipeline_mode = #tpu.pipeline_mode<synchronous>, transform_indices = @transform_2, window_bounds = array<i64: 128, 128>}, {transform_indices = @transform_3, window_bounds = array<i64: 256, 128>}]} {
    %c0_i32 = arith.constant 0 : i32
    %0 = arith.cmpi eq, %arg1, %c0_i32 : i32
    %1 = arith.extui %0 : i1 to i32
    %c0_i32_0 = arith.constant 0 : i32
    %2 = arith.cmpi ne, %1, %c0_i32_0 : i32
    scf.if %2 {
      %c0_8 = arith.constant 0 : index
      %c0_9 = arith.constant 0 : index
      %17 = vector.load %arg4[%c0_8, %c0_9] : memref<128x128xf32, #tpu.memory_space<vmem>>, vector<128x128xf32>
      %c0_10 = arith.constant 0 : index
      %c0_11 = arith.constant 0 : index
      %18 = vector.load %arg5[%c0_10, %c0_11] : memref<256x128xf32, #tpu.memory_space<vmem>>, vector<128x128xf32>
      tpu.vector_store %arg5[%c0_10, %c0_11], %17 {strides = array<i32>} : memref<256x128xf32, #tpu.memory_space<vmem>>, vector<128x128xf32>,
      %c128 = arith.constant 128 : index
      %c0_12 = arith.constant 0 : index
      %19 = vector.load %arg5[%c128, %c0_12] : memref<256x128xf32, #tpu.memory_space<vmem>>, vector<128x128xf32>
      tpu.vector_store %arg5[%c128, %c0_12], %17 {strides = array<i32>} : memref<256x128xf32, #tpu.memory_space<vmem>>, vector<128x128xf32>,
    } else {
    }
    %c0 = arith.constant 0 : index
    %c0_1 = arith.constant 0 : index
    %3 = vector.load %arg2[%c0, %c0_1] : memref<256x1xi32, #tpu.memory_space<vmem>>, vector<256x1xi32>
    %c1024_i32 = arith.constant 1024 : i32
    %4 = arith.muli %arg1, %c1024_i32 : i32
    %5 = vector.broadcast %4 : i32 to vector<256x1xi32>
    %6 = arith.subi %3, %5 : vector<256x1xi32>
    %7 = tpu.iota {dimensions = array<i32: 1>} : vector<256x1024xi32>
    %8 = vector.broadcast %6 : vector<256x1xi32> to vector<256x1024xi32>
    %9 = arith.cmpi eq, %8, %7 : vector<256x1024xi32>
    %10 = arith.extui %9 : vector<256x1024xi1> to vector<256x1024xi32>
    %11 = arith.sitofp %10 : vector<256x1024xi32> to vector<256x1024xf32>
    %c0_2 = arith.constant 0 : index
    %c0_3 = arith.constant 0 : index
    %12 = vector.load %arg5[%c0_2, %c0_3] : memref<256x128xf32, #tpu.memory_space<vmem>>, vector<256x128xf32>
    %c0_4 = arith.constant 0 : index
    %c0_5 = arith.constant 0 : index
    %13 = vector.load %arg3[%c0_4, %c0_5] : memref<1024x128xf32, #tpu.memory_space<vmem>>, vector<1024x128xf32>
    %cst = arith.constant dense<0.000000e+00> : vector<256x128xf32>
    %14 = tpu.matmul %11, %13, %cst {dimension_numbers = #tpu.dot_dimension_numbers<[1], [0], [0], [1], [0, 0, 1, 1], [], []>} : vector<256x1024xf32>, vector<1024x128xf32>, vector<256x128xf32> -> vector<256x128xf32>
    %15 = arith.addf %12, %14 : vector<256x128xf32>
    %c0_6 = arith.constant 0 : index
    %c0_7 = arith.constant 0 : index
    %16 = vector.load %arg5[%c0_6, %c0_7] : memref<256x128xf32, #tpu.memory_space<vmem>>, vector<256x128xf32>
    tpu.vector_store %arg5[%c0_6, %c0_7], %15 {strides = array<i32>} : memref<256x128xf32, #tpu.memory_space<vmem>>, vector<256x128xf32>,
    return
  }
  func.func @transform_0(%arg0: i32, %arg1: i32) -> (i32, i32) {
    %c0_i32 = arith.constant 0 : i32
    %c0_i32_0 = arith.constant 0 : i32
    return %arg0, %c0_i32 : i32, i32
  }
  func.func @transform_1(%arg0: i32, %arg1: i32) -> (i32, i32) {
    %c0_i32 = arith.constant 0 : i32
    %c0_i32_0 = arith.constant 0 : i32
    return %arg1, %c0_i32 : i32, i32
  }
  func.func @transform_2(%arg0: i32, %arg1: i32) -> (i32, i32) {
    %c0_i32 = arith.constant 0 : i32
    %c0_i32_0 = arith.constant 0 : i32
    %c0_i32_1 = arith.constant 0 : i32
    return %c0_i32, %c0_i32_0 : i32, i32
  }
  func.func @transform_3(%arg0: i32, %arg1: i32) -> (i32, i32) {
    %c0_i32 = arith.constant 0 : i32
    %c0_i32_0 = arith.constant 0 : i32
    return %arg0, %c0_i32 : i32, i32
  }
}

</mosaic_0001>

<bundles_post_ra>
// kernel: tpu_custom_call.1
= control target key start
LH: loop header
LB: loop body
LE: loop exit
PB: predicated region body
PF: predicated region fallthrough
CT: control target
= control target key end

     0   :  { %8 = vsyncpa [#allocation3], 0  ;;  %s4559_s0 = inlined_call_operand.vmem [shape: s32[512,1], index: 0, kind: input, shape index: {}]   ;;  %s4560_s1 = inlined_call_operand.hbm [shape: f32[1024,128], index: 1, kind: input, shape index: {}]   ;;  %s4561_s2 = inlined_call_operand.vmem [shape: f32[128,128], index: 2, kind: input, shape index: {}]   ;;  %s4562_s3 = inlined_call_operand.hbm [shape: f32[512,128], index: 3, kind: output, shape index: {}]  }
   0x1   :  { %9 = vsyncpa [#allocation4], 0 }
   0x2   :  { %11 = vsyncpa [#allocation4 + $0x1], 0  ;;  %s3161_s12 = smov 0   ;;  %s3163_s13 = smov 0  }
   0x3   :  { %s3165_s14 = smov 0   ;;  %s3167_s15 = smov 0  }
   0x4   :  { %s3169_s16 = smov 0   ;;  %s3171_s17 = smov 0  }
   0x5 LB: > { %s2421_s18 = sadd.s32 4294967295, %s3130_s17   ;;  %s2422_s19 = sadd.s32 4294967294, %s3130_s17   ;;  %s3130_s17 = sphi %s3171_s17, %s17_s17   ;;  %s3126_s16 = sphi %s3169_s16, %s4571_s16   ;;  %s3122_s15 = sphi %s3167_s15, %s4570_s15   ;;  %s3118_s14 = sphi %s3165_s14, %s4569_s14   ;;  %s3114_s13 = sphi %s3163_s13, %s4568_s13   ;;  %s3110_s12 = sphi %s3161_s12, %s4567_s12  }
   0x6   : > { %s29_s20 = sadd.s32 1, %s3126_s16  ;;  %s109_s21 = sadd.s32 1, %s3118_s14 }
   0x7   : > { %p31_p0 = scmp.ge.s32.totalorder %s29_s20, 2  ;;  %p119_p1 = scmp.ne.s32.totalorder %s3118_s14, %s3114_s13 }
   0x8   : > { %p120_p2 = scmp.eq.s32.totalorder %s2421_s18, 1  ;;  %p125_p3 = scmp.ne.s32.totalorder %s3114_s13, %s3110_s12 }
   0x9   : > { %s4573_s20 = smov (%p31_p0, %s29_s20), 0  ;;  %p126_p5 = scmp.eq.s32.totalorder %s2422_s19, 1 }
   0xa   : > { %p3201_p4 = por %p120_p2, %p119_p1  ;;  %s106_s23 = ssub.s32 %s3126_s16, %s4573_s20 }
   0xb   : > { %p2423_p6 = scmp.ge.s32.totalorder %s3130_s17, 1  ;;  %p107_p7 = scmp.eq.s32.totalorder %s106_s23, 0 }
   0xc   : > { %p3208_p8 = por %p126_p5, %p125_p3  ;;  %p133_p9 = scmp.lt.s32.totalorder %s3130_s17, 3 }
   0xd   : > { %s3214_s25 = scalar_select %p107_p7, %s3118_s14, %s109_s21  }
   0xe   : > { %p3216_p10 = pnand %p2423_p6, %p133_p9  ;;  %p3220_p11 = scmp.eq.s32.totalorder %s2421_s18, 0 }
   0xf   : > { %s3132_s28 = smov [#allocation2]  }
  0x10   : > { %p2955_p12 = pneg %p3216_p10  ;;  %s148_s29 = sshll.u32 %s3132_s28, 4  ;;  %s149_s29 = int_to_ptr.vmem [resolvable:$true] %s148_s29 }
  0x11   : > { %s3035_s30 = scalar_lea.vmem %s149_s29, 16384  ;;  %p3043_p5 = scmp.lt.s32.totalorder %s149_s29, %s149_s29 }
  0x12   : > { %p2956_p13 = pnand %p3220_p11, %p2955_p12  ;;  %p3036_p1 = scmp.ne.s32.totalorder %s149_s29, %s3035_s30 }
  0x13   : > { %p3044_p6 = scmp.lt.s32.totalorder %s3035_s30, %s3035_s30 }
  0x14   : > { %p3026_p0 = pneg %p2956_p13 }
  0x15   : > { %p3045_p7 = por %p3044_p6, %p3043_p5 }
  0x16   : > { %p3038_p2 = pnand %p3036_p1, %p3026_p0 }
  0x18   : > { %p3039_p3 = pneg %p3038_p2 }
  0x1a   : > { %p3046_p9 = pnand %p3045_p7, %p3039_p3 }
  0x1c   : > { %3049 = shalt.err (!%p3046_p9)
}
  0x1d   : > { %s3133_s4 = smov 128   ;;  %s3134_s5 = smov 8  }
  0x1e   : > { %2958 = dma.hbm_to_vmem [thread:$0]  (!%p2956_p13), %s4560_s1, 16384, %s149_s29, [#allocation3], %s3133_s4, %s3133_s4, %s3134_s5  }
  0x1f   : > { %176 = sbr.rel (%p3216_p10) target bundleno = 635 (0x27b), region = 32 }
  0x24   : > { %3101 = dma.done.wait (%p3220_p11), [#allocation3], 16384  }
  0x25   : > { %3103 = vsyncadd (%p3220_p11), [#allocation3], 4294950912  ;;  %s2429_s8 = sshll.u32 %s3122_s15, 5  ;;  %v3135_v0 = vmov 0   ;;  %v3136_v1 = vmov 0.0   ;;  %v1246_v10 = vld [vmem:[#allocation2 + $0x78] sm:$0xff] }
  0x26   : > { %3023 = vset.pattern.permute.xlu1 %v3135_v0  ;;  %3022 = vset.pattern.permute.xlu0 %v3135_v0  ;;  %p201_p12 = scmp.lt.s32.totalorder %s2429_s8, 63  ;;  %v1278_v11 = vld [vmem:[#allocation2 + $0x178] sm:$0xff]  ;;  %v1245_v12 = vld [vmem:[#allocation2 + $0x70] sm:$0xff]  ;;  %v1244_v14 = vld [vmem:[#allocation2 + $0x68] sm:$0xff]  ;;  %s197_s19 = sand.u32 1, %s3114_s13  }
  0x27   : > { %1359 = vmatprep.subr.mxu0 %v3136_v1  ;;  %1584 = vmatprep.subr.mxu1 %v3136_v1  ;;  %v1277_v13 = vld [vmem:[#allocation2 + $0x170] sm:$0xff]  ;;  %v1276_v17 = vld [vmem:[#allocation2 + $0x168] sm:$0xff]  ;;  %v1243_v18 = vld [vmem:[#allocation2 + $0x60] sm:$0xff]  ;;  %s2428_s21 = sshll.u32 %s197_s19, 8  ;;  %s2948_s27 = sshll.u32 %s3122_s15, 12 }
  0x28   : > { %s4575_s8 = smov (!%p201_p12, %s2429_s8), 63  ;;  %1360 = vmatpush1.msra.mxu0 %v1246_v10  ;;  %1585 = vmatpush1.msra.mxu1 %v1278_v11  ;;  %v1275_v19 = vld [vmem:[#allocation2 + $0x160] sm:$0xff]  ;;  %v1242_v22 = vld [vmem:[#allocation2 + $0x58] sm:$0xff]  ;;  %v1241_v24 = vld [vmem:[#allocation2 + $0x50] sm:$0xff]  ;;  %s4338_s29 = scalar_lea.vmem [#allocation5], %s2428_s21 }
  0x29   : > { %s2430_s9 = sshll.u32 %s4575_s8, 3  ;;  %1361 = vmatprep.subr.mxu0 %v3136_v1  ;;  %1586 = vmatprep.subr.mxu1 %v3136_v1  ;;  %v1274_v23 = vld [vmem:[#allocation2 + $0x158] sm:$0xff]  ;;  %v1273_v27 = vld [vmem:[#allocation2 + $0x150] sm:$0xff]  ;;  %v1240_v28 = vld [vmem:[#allocation2 + $0x48] sm:$0xff]  ;;  %s2337_s28 = sshll.u32 %s4338_s29, 4  ;;  %s4508_s28 = int_to_ptr.vmem [resolvable:$true] %s2337_s28 }
  0x2a   : > { %s3243_s18 = scalar_lea.vmem %s4559_s0, %s2430_s9  ;;  %1362 = vmatpush1.msra.mxu0 %v1245_v12  ;;  %1587 = vmatpush1.msra.mxu1 %v1277_v13  ;;  %v1272_v29 = vld [vmem:[#allocation2 + $0x148] sm:$0xff]  ;;  %v1239_v32 = vld [vmem:[#allocation2 + $0x40] sm:$0xff]  ;;  %v1238_v34 = vld [vmem:[#allocation2 + $0x38] sm:$0xff]  ;;  %s4506_s5 = scalar_lea.hbm %s4562_s3, %s2948_s27 }
  0x2b   : > { %v262_v2 = vld [vmem:[%s3243_s18 + $0x10] sm:$0xff]  ;;  %v260_v3 = vld [vmem:[%s3243_s18] sm:$0xff]  ;;  %v263_v4 = vld [vmem:[%s3243_s18 + $0x18] sm:$0xff]  ;;  %1363 = vmatprep.subr.mxu0 %v3136_v1  ;;  %1588 = vmatprep.subr.mxu1 %v3136_v1  ;;  %s4514_s15 = scalar_lea.sflag [#allocation4], %s197_s19  ;;  %s3050_s6 = scalar_lea.vmem %s4508_s28, 4096 }
  0x2c   : > { %342 = vperm.xlu1 %3023, %v262_v2   ;;  %336 = vperm.xlu0 %3022, %v260_v3   ;;  %v261_v5 = vld [vmem:[%s3243_s18 + $0x8] sm:$0xff]  ;;  %v264_v7 = vld [vmem:[%s3243_s18 + $0x20] sm:$0xff]  ;;  %v267_v8 = vld [vmem:[%s3243_s18 + $0x38] sm:$0xff]  ;;  %p3051_p10 = scmp.ne.s32.totalorder %s4508_s28, %s3050_s6  ;;  %s3138_s7 = smov [#allocation5]  }
  0x2d   : > { %v265_v6 = vld [vmem:[%s3243_s18 + $0x28] sm:$0xff]  ;;  %v266_v9 = vld [vmem:[%s3243_s18 + $0x30] sm:$0xff]  ;;  %v268_v16 = vld [vmem:[%s3243_s18 + $0x40] sm:$0xff]  ;;  %1364 = vmatpush1.msra.mxu0 %v1244_v14  ;;  %1589 = vmatpush1.msra.mxu1 %v1276_v17  ;;  %s3054_s8 = sshll.u32 %s3138_s7, 4  ;;  %s3055_s8 = int_to_ptr.vmem [resolvable:$false] %s3054_s8 }
  0x2e   : > { %v269_v15 = vld [vmem:[%s3243_s18 + $0x48] sm:$0xff]  ;;  %v271_v20 = vld [vmem:[%s3243_s18 + $0x58] sm:$0xff]  ;;  %v270_v21 = vld [vmem:[%s3243_s18 + $0x50] sm:$0xff]  ;;  %1365 = vmatprep.subr.mxu0 %v3136_v1  ;;  %1590 = vmatprep.subr.mxu1 %v3136_v1  ;;  %p3052_p11 = pnand %p3051_p10, %p3201_p4  ;;  %s3056_s9 = scalar_lea.vmem %s3055_s8, 8192 }
  0x2f   : > { %1366 = vmatpush1.msra.mxu0 %v1243_v18  ;;  %1591 = vmatpush1.msra.mxu1 %v1275_v19  ;;  %v273_v25 = vld [vmem:[%s3243_s18 + $0x68] sm:$0xff]  ;;  %v272_v26 = vld [vmem:[%s3243_s18 + $0x60] sm:$0xff]  ;;  %v275_v30 = vld [vmem:[%s3243_s18 + $0x78] sm:$0xff]  ;;  %p3057_p0 = scmp.lt.s32.totalorder %s4508_s28, %s3055_s8  ;;  %p3058_p1 = scmp.lt.s32.totalorder %s3056_s9, %s3050_s6 }
  0x30   : > { %345 = vperm.xlu1 %3023, %v263_v4   ;;  %339 = vperm.xlu0 %3022, %v261_v5   ;;  %v274_v31 = vld [vmem:[%s3243_s18 + $0x70] sm:$0xff]  ;;  %v1271_v33 = vld [vmem:[#allocation2 + $0x140] sm:$0xff]  ;;  %v277_v35 = vld [vmem:[%s3243_s18 + $0x88] sm:$0xff]  ;;  %p3053_p13 = pneg %p3052_p11 }
  0x31   : > { %1367 = vmatprep.subr.mxu0 %v3136_v1  ;;  %1592 = vmatprep.subr.mxu1 %v3136_v1  ;;  %v276_v36 = vld [vmem:[%s3243_s18 + $0x80] sm:$0xff]  ;;  %v1270_v37 = vld [vmem:[#allocation2 + $0x138] sm:$0xff]  ;;  %v1237_v38 = vld [vmem:[#allocation2 + $0x30] sm:$0xff]  ;;  %p3059_p2 = por %p3058_p1, %p3057_p0 }
  0x32   : > { %1368 = vmatpush1.msra.mxu0 %v1242_v22  ;;  %1593 = vmatpush1.msra.mxu1 %v1274_v23  ;;  %v1269_v39 = vld [vmem:[#allocation2 + $0x130] sm:$0xff]  ;;  %v279_v40 = vld [vmem:[%s3243_s18 + $0x98] sm:$0xff]  ;;  %v1236_v42 = vld [vmem:[#allocation2 + $0x28] sm:$0xff] }
  0x33   : > { %1369 = vmatprep.subr.mxu0 %v3136_v1  ;;  %1594 = vmatprep.subr.mxu1 %v3136_v1  ;;  %v278_v41 = vld [vmem:[%s3243_s18 + $0x90] sm:$0xff]  ;;  %v1268_v43 = vld [vmem:[#allocation2 + $0x128] sm:$0xff]  ;;  %v1235_v44 = vld [vmem:[#allocation2 + $0x20] sm:$0xff]  ;;  %p3060_p3 = pnand %p3059_p2, %p3053_p13 }
  0x34   : > { %351 = vperm.xlu1 %3023, %v265_v6   ;;  %348 = vperm.xlu0 %3022, %v264_v7   ;;  %v281_v45 = vld [vmem:[%s3243_s18 + $0xa8] sm:$0xff]  ;;  %v280_v46 = vld [vmem:[%s3243_s18 + $0xa0] sm:$0xff]  ;;  %v1234_v48 = vld [vmem:[#allocation2 + $0x18] sm:$0xff] }
  0x35   : > { %1370 = vmatpush1.msra.mxu0 %v1241_v24  ;;  %1595 = vmatpush1.msra.mxu1 %v1273_v27  ;;  %v1267_v47 = vld [vmem:[#allocation2 + $0x120] sm:$0xff]  ;;  %v1266_v49 = vld [vmem:[#allocation2 + $0x118] sm:$0xff]  ;;  %v282_v51 = vld [vmem:[%s3243_s18 + $0xb0] sm:$0xff] }
  0x36   : > { %1371 = vmatprep.subr.mxu0 %v3136_v1  ;;  %1596 = vmatprep.subr.mxu1 %v3136_v1  ;;  %v283_v50 = vld [vmem:[%s3243_s18 + $0xb8] sm:$0xff]  ;;  %v1233_v52 = vld [vmem:[#allocation2 + $0x10] sm:$0xff]  ;;  %v1232_v54 = vld [vmem:[#allocation2 + $0x8] sm:$0xff] }
  0x37   : > { %1372 = vmatpush1.msra.mxu0 %v1240_v28  ;;  %1597 = vmatpush1.msra.mxu1 %v1272_v29  ;;  %v1265_v53 = vld [vmem:[#allocation2 + $0x110] sm:$0xff]  ;;  %v285_v55 = vld [vmem:[%s3243_s18 + $0xc8] sm:$0xff]  ;;  %v284_v56 = vld [vmem:[%s3243_s18 + $0xc0] sm:$0xff] }
  0x38   : > { %357 = vperm.xlu1 %3023, %v267_v8   ;;  %354 = vperm.xlu0 %3022, %v266_v9   ;;  %v1264_v57 = vld [vmem:[#allocation2 + $0x108] sm:$0xff]  ;;  %v1231_v58 = vld [vmem:[#allocation2] sm:$0xff]  ;;  %v287_v60 = vld [vmem:[%s3243_s18 + $0xd8] sm:$0xff] }
  0x39   : > { %1373 = vmatprep.subr.mxu0 %v3136_v1  ;;  %1598 = vmatprep.subr.mxu1 %v3136_v1  ;;  %v1263_v59 = vld [vmem:[#allocation2 + $0x100] sm:$0xff]  ;;  %v286_v61 = vld [vmem:[%s3243_s18 + $0xd0] sm:$0xff]  ;;  %v1262_v62 = vld [vmem:[#allocation2 + $0xf8] sm:$0xff] }
  0x3a   : > { %1374 = vmatpush1.msra.mxu0 %v1239_v32  ;;  %1599 = vmatpush1.msra.mxu1 %v1271_v33  ;;  %v1294_v63 = vld [vmem:[#allocation2 + $0x1f8] sm:$0xff]  ;;  %v1261_v0 = vld [vmem:[#allocation2 + $0xf0] sm:$0xff]  ;;  %v289_v2 = vld [vmem:[%s3243_s18 + $0xe8] sm:$0xff] }
  0x3b   : > { %1375 = vmatprep.subr.mxu0 %v3136_v1  ;;  %1600 = vmatprep.subr.mxu1 %v3136_v1  ;;  %v288_v3 = vld [vmem:[%s3243_s18 + $0xe0] sm:$0xff]  ;;  %v1293_v4 = vld [vmem:[#allocation2 + $0x1f0] sm:$0xff]  ;;  %v1260_v5 = vld [vmem:[#allocation2 + $0xe8] sm:$0xff] }
  0x3c   : > { %363 = vperm.xlu1 %3023, %v269_v15   ;;  %360 = vperm.xlu0 %3022, %v268_v16   ;;  %v1292_v6 = vld [vmem:[#allocation2 + $0x1e8] sm:$0xff]  ;;  %v291_v7 = vld [vmem:[%s3243_s18 + $0xf8] sm:$0xff]  ;;  %v290_v8 = vld [vmem:[%s3243_s18 + $0xf0] sm:$0xff] }
  0x3d   : > { %1376 = vmatpush1.msra.mxu0 %v1238_v34  ;;  %1601 = vmatpush1.msra.mxu1 %v1270_v37  ;;  %v1259_v9 = vld [vmem:[#allocation2 + $0xe0] sm:$0xff]  ;;  %v1258_v11 = vld [vmem:[#allocation2 + $0xd8] sm:$0xff]  ;;  %v1257_v13 = vld [vmem:[#allocation2 + $0xd0] sm:$0xff] }
  0x3e   : > { %1377 = vmatprep.subr.mxu0 %v3136_v1  ;;  %1602 = vmatprep.subr.mxu1 %v3136_v1  ;;  %v1291_v10 = vld [vmem:[#allocation2 + $0x1e0] sm:$0xff]  ;;  %v1290_v12 = vld [vmem:[#allocation2 + $0x1d8] sm:$0xff]  ;;  %v1289_v14 = vld [vmem:[#allocation2 + $0x1d0] sm:$0xff] }
  0x3f   : > { %1378 = vmatpush1.msra.mxu0 %v1237_v38  ;;  %1603 = vmatpush1.msra.mxu1 %v1269_v39  ;;  %v1256_v15 = vld [vmem:[#allocation2 + $0xc8] sm:$0xff]  ;;  %v1255_v17 = vld [vmem:[#allocation2 + $0xc0] sm:$0xff]  ;;  %v1254_v19 = vld [vmem:[#allocation2 + $0xb8] sm:$0xff] }
  0x40   : > { %369 = vperm.xlu1 %3023, %v271_v20   ;;  %366 = vperm.xlu0 %3022, %v270_v21   ;;  %v1288_v16 = vld [vmem:[#allocation2 + $0x1c8] sm:$0xff]  ;;  %v1287_v18 = vld [vmem:[#allocation2 + $0x1c0] sm:$0xff]  ;;  %v1286_v20 = vld [vmem:[#allocation2 + $0x1b8] sm:$0xff] }
  0x41   : > { %1379 = vmatprep.subr.mxu0 %v3136_v1  ;;  %1604 = vmatprep.subr.mxu1 %v3136_v1  ;;  %v1253_v21 = vld [vmem:[#allocation2 + $0xb0] sm:$0xff]  ;;  %v1252_v23 = vld [vmem:[#allocation2 + $0xa8] sm:$0xff]  ;;  %v1250_v27 = vld [vmem:[#allocation2 + $0x98] sm:$0xff] }
  0x42   : > { %1380 = vmatpush1.msra.mxu0 %v1236_v42  ;;  %1605 = vmatpush1.msra.mxu1 %v1268_v43  ;;  %v1285_v22 = vld [vmem:[#allocation2 + $0x1b0] sm:$0xff]  ;;  %v1284_v24 = vld [vmem:[#allocation2 + $0x1a8] sm:$0xff]  ;;  %v1282_v28 = vld [vmem:[#allocation2 + $0x198] sm:$0xff]  ;;  %v3137_v43 = vmov 1.0  }
  0x43   : > { %1381 = vmatprep.subr.mxu0 %v3136_v1  ;;  %1606 = vmatprep.subr.mxu1 %v3136_v1  ;;  %v1249_v29 = vld [vmem:[#allocation2 + $0x90] sm:$0xff]  ;;  %v1280_v32 = vld [vmem:[#allocation2 + $0x188] sm:$0xff]  ;;  %v1247_v33 = vld [vmem:[#allocation2 + $0x80] sm:$0xff] }
  0x44   : > { %375 = vperm.xlu1 %3023, %v273_v25   ;;  %372 = vperm.xlu0 %3022, %v272_v26   ;;  %v1251_v25 = vld [vmem:[#allocation2 + $0xa0] sm:$0xff]  ;;  %v1342_v42 = vld [vmem:[#allocation2 + $0x378] sm:$0xff] }
  0x45   : > { %1382 = vmatpush1.msra.mxu0 %v1235_v44  ;;  %1607 = vmatpush1.msra.mxu1 %v1267_v47  ;;  %v1283_v26 = vld [vmem:[#allocation2 + $0x1a0] sm:$0xff]  ;;  %v1341_v47 = vld [vmem:[#allocation2 + $0x370] sm:$0xff] }
  0x46   : > { %1383 = vmatprep.subr.mxu0 %v3136_v1  ;;  %1608 = vmatprep.subr.mxu1 %v3136_v1  ;;  %v1279_v34 = vld [vmem:[#allocation2 + $0x180] sm:$0xff] }
  0x47   : > { %1384 = vmatpush1.msra.mxu0 %v1234_v48  ;;  %1609 = vmatpush1.msra.mxu1 %v1266_v49  ;;  %v1308_v48 = vld [vmem:[#allocation2 + $0x268] sm:$0xff] }
  0x48   : > { %381 = vperm.xlu1 %3023, %v275_v30   ;;  %378 = vperm.xlu0 %3022, %v274_v31   ;;  %v1281_v30 = vld [vmem:[#allocation2 + $0x190] sm:$0xff]  ;;  %v1248_v31 = vld [vmem:[#allocation2 + $0x88] sm:$0xff] }
  0x49   : > { %1385 = vmatprep.subr.mxu0 %v3136_v1  ;;  %1610 = vmatprep.subr.mxu1 %v3136_v1 }
  0x4a   : > { %1386 = vmatpush1.msra.mxu0 %v1233_v52  ;;  %1611 = vmatpush1.msra.mxu1 %v1265_v53  ;;  %v1307_v52 = vld [vmem:[#allocation2 + $0x260] sm:$0xff] }
  0x4b   : > { %1387 = vmatprep.subr.mxu0 %v3136_v1  ;;  %1612 = vmatprep.subr.mxu1 %v3136_v1  ;;  %v1339_v53 = vld [vmem:[#allocation2 + $0x360] sm:$0xff] }
  0x4c   : > { %387 = vperm.xlu1 %3023, %v277_v35   ;;  %384 = vperm.xlu0 %3022, %v276_v36   ;;  %v326_v35 = vlaneseq }
  0x4d   : > { %1388 = vmatpush1.msra.mxu0 %v1232_v54  ;;  %1613 = vmatpush1.msra.mxu1 %v1264_v57 }
  0x4e   : > { %1389 = vmatprep.subr.mxu0 %v3136_v1  ;;  %1614 = vmatprep.subr.mxu1 %v3136_v1  ;;  %v3341_v36 = vand.u32 127, %v326_v35  ;;  %v1356_v35 = vld [vmem:[#allocation2 + $0x3e8] sm:$0xff] }
  0x4f   : > { %1390 = vmatpush1.msra.mxu0 %v1231_v58  ;;  %1615 = vmatpush1.msra.mxu1 %v1263_v59  ;;  %v1305_v58 = vld [vmem:[#allocation2 + $0x250] sm:$0xff] }
  0x50   : > { %393 = vperm.xlu1 %3023, %v279_v40   ;;  %390 = vperm.xlu0 %3022, %v278_v41   ;;  %v3344_v37 = vadd.s32 128, %v3341_v36  ;;  %v3347_v38 = vadd.s32 384, %v3341_v36  ;;  %v3350_v39 = vadd.s32 256, %v3341_v36  ;;  %v1310_v41 = vld [vmem:[#allocation2 + $0x278] sm:$0xff]  ;;  %v1337_v59 = vld [vmem:[#allocation2 + $0x350] sm:$0xff] }
  0x51   : > { %1391 = vmatprep.subr.mxu0 %v3136_v1  ;;  %1616 = vmatprep.subr.mxu1 %v3136_v1 }
  0x52   : > { %1392 = vmatpush2.msra.mxu0 %v1262_v62  ;;  %1617 = vmatpush2.msra.mxu1 %v1294_v63  ;;  %v1336_v62 = vld [vmem:[#allocation2 + $0x348] sm:$0xff] }
  0x53   : > { %1393 = vmatprep.subr.mxu0 %v3136_v1  ;;  %1618 = vmatprep.subr.mxu1 %v3136_v1 }
  0x54   : > { %399 = vperm.xlu1 %3023, %v281_v45   ;;  %396 = vperm.xlu0 %3022, %v280_v46   ;;  %v1309_v46 = vld [vmem:[#allocation2 + $0x270] sm:$0xff] }
  0x55   : > { %1394 = vmatpush2.msra.mxu0 %v1261_v0  ;;  %1619 = vmatpush2.msra.mxu1 %v1293_v4  ;;  %v1303_v0 = vld [vmem:[#allocation2 + $0x240] sm:$0xff]  ;;  %v1302_v4 = vld [vmem:[#allocation2 + $0x238] sm:$0xff] }
  0x56   : > { %1395 = vmatprep.subr.mxu0 %v3136_v1  ;;  %1620 = vmatprep.subr.mxu1 %v3136_v1 }
  0x57   : > { %1396 = vmatpush2.msra.mxu0 %v1260_v5  ;;  %1621 = vmatpush2.msra.mxu1 %v1292_v6  ;;  %v1334_v5 = vld [vmem:[#allocation2 + $0x338] sm:$0xff] }
  0x58   : > { %405 = vperm.xlu1 %3023, %v283_v50   ;;  %402 = vperm.xlu0 %3022, %v282_v51   ;;  %v1340_v50 = vld [vmem:[#allocation2 + $0x368] sm:$0xff] }
  0x59   : > { %1397 = vmatprep.subr.mxu0 %v3136_v1  ;;  %1622 = vmatprep.subr.mxu1 %v3136_v1 }
  0x5a   : > { %1398 = vmatpush2.msra.mxu0 %v1259_v9  ;;  %1623 = vmatpush2.msra.mxu1 %v1291_v10  ;;  %v1300_v10 = vld [vmem:[#allocation2 + $0x228] sm:$0xff] }
  0x5b   : > { %1399 = vmatprep.subr.mxu0 %v3136_v1  ;;  %1624 = vmatprep.subr.mxu1 %v3136_v1 }
  0x5c   : > { %411 = vperm.xlu1 %3023, %v285_v55   ;;  %408 = vperm.xlu0 %3022, %v284_v56   ;;  %v1306_v55 = vld [vmem:[#allocation2 + $0x258] sm:$0xff] }
  0x5d   : > { %1400 = vmatpush2.msra.mxu0 %v1258_v11  ;;  %1625 = vmatpush2.msra.mxu1 %v1290_v12  ;;  %v1338_v56 = vld [vmem:[#allocation2 + $0x358] sm:$0xff]  ;;  %v1332_v11 = vld [vmem:[#allocation2 + $0x328] sm:$0xff] }
  0x5e   : > { %1401 = vmatprep.subr.mxu0 %v3136_v1  ;;  %1626 = vmatprep.subr.mxu1 %v3136_v1 }
  0x5f   : > { %1402 = vmatpush2.msra.mxu0 %v1257_v13  ;;  %1627 = vmatpush2.msra.mxu1 %v1289_v14  ;;  %v1299_v13 = vld [vmem:[#allocation2 + $0x220] sm:$0xff] }
  0x60   : > { %417 = vperm.xlu1 %3023, %v287_v60   ;;  %414 = vperm.xlu0 %3022, %v286_v61   ;;  %v1304_v61 = vld [vmem:[#allocation2 + $0x248] sm:$0xff]  ;;  %v1331_v14 = vld [vmem:[#allocation2 + $0x320] sm:$0xff] }
  0x61   : > { %1403 = vmatprep.subr.mxu0 %v3136_v1  ;;  %1628 = vmatprep.subr.mxu1 %v3136_v1 }
  0x62   : > { %1404 = vmatpush2.msra.mxu0 %v1256_v15  ;;  %1629 = vmatpush2.msra.mxu1 %v1288_v16  ;;  %v1298_v16 = vld [vmem:[#allocation2 + $0x218] sm:$0xff] }
  0x63   : > { %1405 = vmatprep.subr.mxu0 %v3136_v1  ;;  %1630 = vmatprep.subr.mxu1 %v3136_v1 }
  0x64   : > { %423 = vperm.xlu1 %3023, %v289_v2   ;;  %420 = vperm.xlu0 %3022, %v288_v3   ;;  %v1335_v2 = vld [vmem:[#allocation2 + $0x340] sm:$0xff] }
  0x65   : > { %1406 = vmatpush2.msra.mxu0 %v1255_v17  ;;  %1631 = vmatpush2.msra.mxu1 %v1287_v18  ;;  %v1330_v17 = vld [vmem:[#allocation2 + $0x318] sm:$0xff] }
  0x66   : > { %1407 = vmatprep.subr.mxu0 %v3136_v1  ;;  %1632 = vmatprep.subr.mxu1 %v3136_v1 }
  0x67   : > { %1408 = vmatpush2.msra.mxu0 %v1254_v19  ;;  %1633 = vmatpush2.msra.mxu1 %v1286_v20  ;;  %v1297_v19 = vld [vmem:[#allocation2 + $0x210] sm:$0xff] }
  0x68   : > { %429 = vperm.xlu1 %3023, %v291_v7   ;;  %426 = vperm.xlu0 %3022, %v290_v8   ;;  %v1301_v7 = vld [vmem:[#allocation2 + $0x230] sm:$0xff] }
  0x69   : > { %1409 = vmatprep.subr.mxu0 %v3136_v1  ;;  %1634 = vmatprep.subr.mxu1 %v3136_v1  ;;  %v1333_v8 = vld [vmem:[#allocation2 + $0x330] sm:$0xff] }
  0x6a   : > { %1410 = vmatpush2.msra.mxu0 %v1253_v21  ;;  %1635 = vmatpush2.msra.mxu1 %v1285_v22  ;;  %v1329_v20 = vld [vmem:[#allocation2 + $0x310] sm:$0xff]  ;;  %v1296_v22 = vld [vmem:[#allocation2 + $0x208] sm:$0xff] }
  0x6b   : > { %1411 = vmatprep.subr.mxu0 %v3136_v1  ;;  %1636 = vmatprep.subr.mxu1 %v3136_v1 }
  0x6c   : > { %1412 = vmatpush2.msra.mxu0 %v1252_v23  ;;  %1637 = vmatpush2.msra.mxu1 %v1284_v24  ;;  %v1328_v23 = vld [vmem:[#allocation2 + $0x308] sm:$0xff] }
  0x6d   : > { %1413 = vmatprep.subr.mxu0 %v3136_v1  ;;  %1638 = vmatprep.subr.mxu1 %v3136_v1 }
  0x6e   : > { %1414 = vmatpush2.msra.mxu0 %v1251_v25  ;;  %1639 = vmatpush2.msra.mxu1 %v1283_v26  ;;  %v1295_v25 = vld [vmem:[#allocation2 + $0x200] sm:$0xff] }
  0x6f   : > { %1415 = vmatprep.subr.mxu0 %v3136_v1  ;;  %1640 = vmatprep.subr.mxu1 %v3136_v1  ;;  %v1327_v26 = vld [vmem:[#allocation2 + $0x300] sm:$0xff] }
  0x70   : > { %1416 = vmatpush2.msra.mxu0 %v1250_v27  ;;  %1641 = vmatpush2.msra.mxu1 %v1282_v28  ;;  %v1326_v28 = vld [vmem:[#allocation2 + $0x2f8] sm:$0xff] }
  0x71   : > { %1417 = vmatprep.subr.mxu0 %v3136_v1  ;;  %1642 = vmatprep.subr.mxu1 %v3136_v1 }
  0x72   : > { %1418 = vmatpush2.msra.mxu0 %v1249_v29  ;;  %1643 = vmatpush2.msra.mxu1 %v1281_v30  ;;  %v1358_v29 = vld [vmem:[#allocation2 + $0x3f8] sm:$0xff] }
  0x73   : > { %1419 = vmatprep.subr.mxu0 %v3136_v1  ;;  %1644 = vmatprep.subr.mxu1 %v3136_v1 }
  0x74   : > { %1420 = vmatpush2.msra.mxu0 %v1248_v31  ;;  %1645 = vmatpush2.msra.mxu1 %v1280_v32  ;;  %v1325_v31 = vld [vmem:[#allocation2 + $0x2f0] sm:$0xff] }
  0x75   : > { %1421 = vmatprep.subr.mxu0 %v3136_v1  ;;  %1646 = vmatprep.subr.mxu1 %v3136_v1  ;;  %v1357_v32 = vld [vmem:[#allocation2 + $0x3f0] sm:$0xff] }
  0x76   : > { %1422 = vmatpush2.msra.mxu0 %v1247_v33  ;;  %1647 = vmatpush2.msra.mxu1 %v1279_v34  ;;  %v1324_v34 = vld [vmem:[#allocation2 + $0x2e8] sm:$0xff] }
  0x77   : > { %1809 = vmatprep.subr.mxu0 %v3136_v1  ;;  %2034 = vmatprep.subr.mxu1 %v3136_v1 }
  0xa7   : > { %v3352_v40 = vpop.permute.xlu0 %336  ;;  %v3366_v44 = vpop.permute.xlu1 %342 }
  0xa8   : > { %vm432_vm0 = vcmp.eq.s32.totalorder %v3352_v40, %v3344_v37  ;;  %vm434_vm1 = vcmp.eq.s32.totalorder %v3352_v40, %v3347_v38  ;;  %vm431_vm2 = vcmp.eq.s32.totalorder %v3352_v40, %v3341_v36  ;;  %vm433_vm3 = vcmp.eq.s32.totalorder %v3352_v40, %v3350_v39 }
  0xa9   : > { %2687 = vmatprep.mubr.msk.f32.mxu0 %vm432_vm0, %v3137_v43  ;;  %2751 = vmatprep.mubr.msk.f32.mxu1 %vm434_vm1, %v3137_v43  ;;  %vm448_vm8 = vcmp.eq.s32.totalorder %v3366_v44, %v3344_v37  ;;  %vm450_vm9 = vcmp.eq.s32.totalorder %v3366_v44, %v3347_v38  ;;  %vm447_vm10 = vcmp.eq.s32.totalorder %v3366_v44, %v3341_v36 }
  0xaa   : > { %2688 = vmatmul.mubr.msk.f32.vlgmr.msra.gmra.mxu0 %vm431_vm2, %v3137_v43  ;;  %2752 = vmatmul.mubr.msk.f32.vlgmr.msra.gmra.mxu1 %vm433_vm3, %v3137_v43  ;;  %vm449_vm11 = vcmp.eq.s32.totalorder %v3366_v44, %v3350_v39 }
  0xab   : > { %1810 = vmatpush1.msra.mxu0 %v1310_v41  ;;  %v3368_v45 = vpop.permute.xlu0 %339  ;;  %2035 = vmatpush1.msra.mxu1 %v1342_v42  ;;  %v3393_v49 = vpop.permute.xlu1 %345  ;;  %v1323_v42 = vld [vmem:[#allocation2 + $0x2e0] sm:$0xff] }
  0xac   : > { %vm440_vm4 = vcmp.eq.s32.totalorder %v3368_v45, %v3344_v37  ;;  %vm442_vm5 = vcmp.eq.s32.totalorder %v3368_v45, %v3347_v38  ;;  %1811 = vmatprep.subr.mxu0 %v3136_v1  ;;  %vm439_vm6 = vcmp.eq.s32.totalorder %v3368_v45, %v3341_v36  ;;  %vm441_vm7 = vcmp.eq.s32.totalorder %v3368_v45, %v3350_v39 }
  0xad   : > { %2689 = vmatprep.mubr.msk.f32.mxu0 %vm440_vm4, %v3137_v43  ;;  %2753 = vmatprep.mubr.msk.f32.mxu1 %vm442_vm5, %v3137_v43  ;;  %vm456_vm12 = vcmp.eq.s32.totalorder %v3393_v49, %v3344_v37  ;;  %vm458_vm13 = vcmp.eq.s32.totalorder %v3393_v49, %v3347_v38  ;;  %vm455_vm14 = vcmp.eq.s32.totalorder %v3393_v49, %v3341_v36 }
  0xae   : > { %2690 = vmatmul.mubr.msk.f32.gmra.mxu0 %vm439_vm6, %v3137_v43  ;;  %2754 = vmatmul.mubr.msk.f32.gmra.mxu1 %vm441_vm7, %v3137_v43  ;;  %vm457_vm15 = vcmp.eq.s32.totalorder %v3393_v49, %v3350_v39 }
  0xaf   : > { %1812 = vmatpush1.msra.mxu0 %v1309_v46  ;;  %2036 = vmatprep.subr.mxu1 %v3136_v1  ;;  %v3401_v51 = vpop.permute.xlu0 %348  ;;  %v3417_v54 = vpop.permute.xlu1 %351  ;;  %v1355_v46 = vld [vmem:[#allocation2 + $0x3e0] sm:$0xff] }
  0xb0   : > { %2037 = vmatpush1.msra.mxu1 %v1341_v47  ;;  %2691 = vmatprep.mubr.msk.f32.mxu0 %vm448_vm8, %v3137_v43  ;;  %vm464_vm0 = vcmp.eq.s32.totalorder %v3401_v51, %v3344_v37  ;;  %vm466_vm1 = vcmp.eq.s32.totalorder %v3401_v51, %v3347_v38  ;;  %vm463_vm2 = vcmp.eq.s32.totalorder %v3401_v51, %v3341_v36 }
  0xb1   : > { %2755 = vmatprep.mubr.msk.f32.mxu1 %vm450_vm9, %v3137_v43  ;;  %1813 = vmatprep.subr.mxu0 %v3136_v1  ;;  %vm465_vm3 = vcmp.eq.s32.totalorder %v3401_v51, %v3350_v39  ;;  %vm472_vm4 = vcmp.eq.s32.totalorder %v3417_v54, %v3344_v37  ;;  %vm474_vm5 = vcmp.eq.s32.totalorder %v3417_v54, %v3347_v38 }
  0xb2   : > { %2692 = vmatmul.mubr.msk.f32.gmra.mxu0 %vm447_vm10, %v3137_v43  ;;  %2756 = vmatmul.mubr.msk.f32.gmra.mxu1 %vm449_vm11, %v3137_v43  ;;  %vm471_vm6 = vcmp.eq.s32.totalorder %v3417_v54, %v3341_v36  ;;  %vm473_vm7 = vcmp.eq.s32.totalorder %v3417_v54, %v3350_v39 }
  0xb3   : > { %1814 = vmatpush1.msra.mxu0 %v1308_v48  ;;  %2693 = vmatprep.mubr.msk.f32.mxu0 %vm456_vm12, %v3137_v43  ;;  %v3433_v57 = vpop.permute.xlu0 %354  ;;  %v3449_v60 = vpop.permute.xlu1 %357  ;;  %v1322_v48 = vld [vmem:[#allocation2 + $0x2d8] sm:$0xff] }
  0xb4   : > { %2757 = vmatprep.mubr.msk.f32.mxu1 %vm458_vm13, %v3137_v43  ;;  %2038 = vmatprep.subr.mxu1 %v3136_v1  ;;  %vm480_vm8 = vcmp.eq.s32.totalorder %v3433_v57, %v3344_v37  ;;  %vm482_vm9 = vcmp.eq.s32.totalorder %v3433_v57, %v3347_v38  ;;  %vm479_vm10 = vcmp.eq.s32.totalorder %v3433_v57, %v3341_v36 }
  0xb5   : > { %2039 = vmatpush1.msra.mxu1 %v1340_v50  ;;  %1815 = vmatprep.subr.mxu0 %v3136_v1  ;;  %vm481_vm11 = vcmp.eq.s32.totalorder %v3433_v57, %v3350_v39  ;;  %vm488_vm12 = vcmp.eq.s32.totalorder %v3449_v60, %v3344_v37  ;;  %vm490_vm13 = vcmp.eq.s32.totalorder %v3449_v60, %v3347_v38  ;;  %v1354_v50 = vld [vmem:[#allocation2 + $0x3d8] sm:$0xff] }
  0xb6   : > { %2694 = vmatmul.mubr.msk.f32.gmra.mxu0 %vm455_vm14, %v3137_v43  ;;  %2758 = vmatmul.mubr.msk.f32.gmra.mxu1 %vm457_vm15, %v3137_v43  ;;  %vm487_vm14 = vcmp.eq.s32.totalorder %v3449_v60, %v3341_v36  ;;  %vm489_vm15 = vcmp.eq.s32.totalorder %v3449_v60, %v3350_v39 }
  0xb7   : > { %1816 = vmatpush1.msra.mxu0 %v1307_v52  ;;  %2695 = vmatprep.mubr.msk.f32.mxu0 %vm464_vm0, %v3137_v43  ;;  %v3465_v63 = vpop.permute.xlu0 %360  ;;  %v3481_v3 = vpop.permute.xlu1 %363 }
  0xb8   : > { %2759 = vmatprep.mubr.msk.f32.mxu1 %vm466_vm1, %v3137_v43  ;;  %2040 = vmatprep.subr.mxu1 %v3136_v1  ;;  %vm496_vm0 = vcmp.eq.s32.totalorder %v3465_v63, %v3344_v37  ;;  %vm498_vm1 = vcmp.eq.s32.totalorder %v3465_v63, %v3347_v38 }
  0xb9   : > { %2041 = vmatpush1.msra.mxu1 %v1339_v53  ;;  %1817 = vmatprep.subr.mxu0 %v3136_v1  ;;  %v1321_v53 = vld [vmem:[#allocation2 + $0x2d0] sm:$0xff] }
  0xba   : > { %2696 = vmatmul.mubr.msk.f32.gmra.mxu0 %vm463_vm2, %v3137_v43  ;;  %2760 = vmatmul.mubr.msk.f32.gmra.mxu1 %vm465_vm3, %v3137_v43  ;;  %vm495_vm2 = vcmp.eq.s32.totalorder %v3465_v63, %v3341_v36  ;;  %vm497_vm3 = vcmp.eq.s32.totalorder %v3465_v63, %v3350_v39 }
  0xbb   : > { %1818 = vmatpush1.msra.mxu0 %v1306_v55  ;;  %2697 = vmatprep.mubr.msk.f32.mxu0 %vm472_vm4, %v3137_v43  ;;  %vm504_vm4 = vcmp.eq.s32.totalorder %v3481_v3, %v3344_v37  ;;  %v3497_v6 = vpop.permute.xlu0 %366  ;;  %v3513_v9 = vpop.permute.xlu1 %369  ;;  %v1353_v55 = vld [vmem:[#allocation2 + $0x3d0] sm:$0xff] }
  0xbc   : > { %2761 = vmatprep.mubr.msk.f32.mxu1 %vm474_vm5, %v3137_v43  ;;  %2042 = vmatprep.subr.mxu1 %v3136_v1  ;;  %vm506_vm5 = vcmp.eq.s32.totalorder %v3481_v3, %v3347_v38 }
  0xbd   : > { %2043 = vmatpush1.msra.mxu1 %v1338_v56  ;;  %1819 = vmatprep.subr.mxu0 %v3136_v1 }
  0xbe   : > { %2698 = vmatmul.mubr.msk.f32.gmra.mxu0 %vm471_vm6, %v3137_v43  ;;  %2762 = vmatmul.mubr.msk.f32.gmra.mxu1 %vm473_vm7, %v3137_v43  ;;  %vm503_vm6 = vcmp.eq.s32.totalorder %v3481_v3, %v3341_v36  ;;  %vm505_vm7 = vcmp.eq.s32.totalorder %v3481_v3, %v3350_v39 }
  0xbf   : > { %1820 = vmatpush1.msra.mxu0 %v1305_v58  ;;  %2699 = vmatprep.mubr.msk.f32.mxu0 %vm480_vm8, %v3137_v43  ;;  %vm512_vm8 = vcmp.eq.s32.totalorder %v3497_v6, %v3344_v37  ;;  %v3529_v12 = vpop.permute.xlu0 %372  ;;  %v3545_v15 = vpop.permute.xlu1 %375  ;;  %v1320_v58 = vld [vmem:[#allocation2 + $0x2c8] sm:$0xff] }
  0xc0   : > { %2763 = vmatprep.mubr.msk.f32.mxu1 %vm482_vm9, %v3137_v43  ;;  %2044 = vmatprep.subr.mxu1 %v3136_v1  ;;  %vm514_vm9 = vcmp.eq.s32.totalorder %v3497_v6, %v3347_v38 }
  0xc1   : > { %2045 = vmatpush1.msra.mxu1 %v1337_v59  ;;  %1821 = vmatprep.subr.mxu0 %v3136_v1  ;;  %v1352_v59 = vld [vmem:[#allocation2 + $0x3c8] sm:$0xff] }
  0xc2   : > { %2700 = vmatmul.mubr.msk.f32.gmra.mxu0 %vm479_vm10, %v3137_v43  ;;  %2764 = vmatmul.mubr.msk.f32.gmra.mxu1 %vm481_vm11, %v3137_v43  ;;  %vm511_vm10 = vcmp.eq.s32.totalorder %v3497_v6, %v3341_v36  ;;  %vm513_vm11 = vcmp.eq.s32.totalorder %v3497_v6, %v3350_v39 }
  0xc3   : > { %1822 = vmatpush1.msra.mxu0 %v1304_v61  ;;  %2701 = vmatprep.mubr.msk.f32.mxu0 %vm488_vm12, %v3137_v43  ;;  %vm520_vm12 = vcmp.eq.s32.totalorder %v3513_v9, %v3344_v37  ;;  %v3561_v18 = vpop.permute.xlu0 %378  ;;  %v3577_v21 = vpop.permute.xlu1 %381 }
  0xc4   : > { %2765 = vmatprep.mubr.msk.f32.mxu1 %vm490_vm13, %v3137_v43  ;;  %2046 = vmatprep.subr.mxu1 %v3136_v1  ;;  %vm522_vm13 = vcmp.eq.s32.totalorder %v3513_v9, %v3347_v38 }
  0xc5   : > { %2047 = vmatpush1.msra.mxu1 %v1336_v62  ;;  %1823 = vmatprep.subr.mxu0 %v3136_v1  ;;  %v1319_v62 = vld [vmem:[#allocation2 + $0x2c0] sm:$0xff] }
  0xc6   : > { %2702 = vmatmul.mubr.msk.f32.gmra.mxu0 %vm487_vm14, %v3137_v43  ;;  %2766 = vmatmul.mubr.msk.f32.gmra.mxu1 %vm489_vm15, %v3137_v43  ;;  %vm519_vm14 = vcmp.eq.s32.totalorder %v3513_v9, %v3341_v36  ;;  %vm521_vm15 = vcmp.eq.s32.totalorder %v3513_v9, %v3350_v39 }
  0xc7   : > { %1824 = vmatpush1.msra.mxu0 %v1303_v0  ;;  %2703 = vmatprep.mubr.msk.f32.mxu0 %vm496_vm0, %v3137_v43  ;;  %vm528_vm0 = vcmp.eq.s32.totalorder %v3529_v12, %v3344_v37  ;;  %v3593_v24 = vpop.permute.xlu0 %384  ;;  %v3609_v27 = vpop.permute.xlu1 %387  ;;  %v1351_v0 = vld [vmem:[#allocation2 + $0x3c0] sm:$0xff] }
  0xc8   : > { %2767 = vmatprep.mubr.msk.f32.mxu1 %vm498_vm1, %v3137_v43  ;;  %2048 = vmatprep.subr.mxu1 %v3136_v1  ;;  %vm530_vm1 = vcmp.eq.s32.totalorder %v3529_v12, %v3347_v38 }
  0xc9   : > { %2049 = vmatpush1.msra.mxu1 %v1335_v2  ;;  %1825 = vmatprep.subr.mxu0 %v3136_v1 }
  0xca   : > { %2704 = vmatmul.mubr.msk.f32.gmra.mxu0 %vm495_vm2, %v3137_v43  ;;  %2768 = vmatmul.mubr.msk.f32.gmra.mxu1 %vm497_vm3, %v3137_v43  ;;  %vm527_vm2 = vcmp.eq.s32.totalorder %v3529_v12, %v3341_v36  ;;  %vm529_vm3 = vcmp.eq.s32.totalorder %v3529_v12, %v3350_v39 }
  0xcb   : > { %1826 = vmatpush1.msra.mxu0 %v1302_v4  ;;  %2705 = vmatprep.mubr.msk.f32.mxu0 %vm504_vm4, %v3137_v43  ;;  %vm536_vm4 = vcmp.eq.s32.totalorder %v3545_v15, %v3344_v37  ;;  %v3625_v30 = vpop.permute.xlu0 %390  ;;  %v3641_v33 = vpop.permute.xlu1 %393  ;;  %v1318_v4 = vld [vmem:[#allocation2 + $0x2b8] sm:$0xff] }
  0xcc   : > { %2769 = vmatprep.mubr.msk.f32.mxu1 %vm506_vm5, %v3137_v43  ;;  %2050 = vmatprep.subr.mxu1 %v3136_v1  ;;  %vm538_vm5 = vcmp.eq.s32.totalorder %v3545_v15, %v3347_v38 }
  0xcd   : > { %2051 = vmatpush1.msra.mxu1 %v1334_v5  ;;  %1827 = vmatprep.subr.mxu0 %v3136_v1  ;;  %v1350_v5 = vld [vmem:[#allocation2 + $0x3b8] sm:$0xff] }
  0xce   : > { %2706 = vmatmul.mubr.msk.f32.gmra.mxu0 %vm503_vm6, %v3137_v43  ;;  %2770 = vmatmul.mubr.msk.f32.gmra.mxu1 %vm505_vm7, %v3137_v43  ;;  %vm535_vm6 = vcmp.eq.s32.totalorder %v3545_v15, %v3341_v36  ;;  %vm537_vm7 = vcmp.eq.s32.totalorder %v3545_v15, %v3350_v39 }
  0xcf   : > { %1828 = vmatpush1.msra.mxu0 %v1301_v7  ;;  %2707 = vmatprep.mubr.msk.f32.mxu0 %vm512_vm8, %v3137_v43  ;;  %vm544_vm8 = vcmp.eq.s32.totalorder %v3561_v18, %v3344_v37  ;;  %v3657_v41 = vpop.permute.xlu0 %396  ;;  %v3673_v47 = vpop.permute.xlu1 %399 }
  0xd0   : > { %2771 = vmatprep.mubr.msk.f32.mxu1 %vm514_vm9, %v3137_v43  ;;  %2052 = vmatprep.subr.mxu1 %v3136_v1  ;;  %vm546_vm9 = vcmp.eq.s32.totalorder %v3561_v18, %v3347_v38 }
  0xd1   : > { %2053 = vmatpush1.msra.mxu1 %v1333_v8  ;;  %1829 = vmatprep.subr.mxu0 %v3136_v1  ;;  %v1317_v8 = vld [vmem:[#allocation2 + $0x2b0] sm:$0xff] }
  0xd2   : > { %2708 = vmatmul.mubr.msk.f32.gmra.mxu0 %vm511_vm10, %v3137_v43  ;;  %2772 = vmatmul.mubr.msk.f32.gmra.mxu1 %vm513_vm11, %v3137_v43  ;;  %vm543_vm10 = vcmp.eq.s32.totalorder %v3561_v18, %v3341_v36  ;;  %vm545_vm11 = vcmp.eq.s32.totalorder %v3561_v18, %v3350_v39 }
  0xd3   : > { %1830 = vmatpush1.msra.mxu0 %v1300_v10  ;;  %2709 = vmatprep.mubr.msk.f32.mxu0 %vm520_vm12, %v3137_v43  ;;  %vm552_vm12 = vcmp.eq.s32.totalorder %v3577_v21, %v3344_v37  ;;  %v3689_v52 = vpop.permute.xlu0 %402  ;;  %v3705_v56 = vpop.permute.xlu1 %405  ;;  %v1349_v10 = vld [vmem:[#allocation2 + $0x3b0] sm:$0xff] }
  0xd4   : > { %2773 = vmatprep.mubr.msk.f32.mxu1 %vm522_vm13, %v3137_v43  ;;  %2054 = vmatprep.subr.mxu1 %v3136_v1  ;;  %vm554_vm13 = vcmp.eq.s32.totalorder %v3577_v21, %v3347_v38 }
  0xd5   : > { %2055 = vmatpush1.msra.mxu1 %v1332_v11  ;;  %1831 = vmatprep.subr.mxu0 %v3136_v1 }
  0xd6   : > { %2710 = vmatmul.mubr.msk.f32.gmra.mxu0 %vm519_vm14, %v3137_v43  ;;  %2774 = vmatmul.mubr.msk.f32.gmra.mxu1 %vm521_vm15, %v3137_v43  ;;  %vm551_vm14 = vcmp.eq.s32.totalorder %v3577_v21, %v3341_v36  ;;  %vm553_vm15 = vcmp.eq.s32.totalorder %v3577_v21, %v3350_v39 }
  0xd7   : > { %1832 = vmatpush1.msra.mxu0 %v1299_v13  ;;  %2711 = vmatprep.mubr.msk.f32.mxu0 %vm528_vm0, %v3137_v43  ;;  %vm560_vm0 = vcmp.eq.s32.totalorder %v3593_v24, %v3344_v37  ;;  %v3721_v61 = vpop.permute.xlu0 %408  ;;  %v3737_v2 = vpop.permute.xlu1 %411  ;;  %v1316_v13 = vld [vmem:[#allocation2 + $0x2a8] sm:$0xff] }
  0xd8   : > { %2775 = vmatprep.mubr.msk.f32.mxu1 %vm530_vm1, %v3137_v43  ;;  %2056 = vmatprep.subr.mxu1 %v3136_v1  ;;  %vm562_vm1 = vcmp.eq.s32.totalorder %v3593_v24, %v3347_v38 }
  0xd9   : > { %2057 = vmatpush1.msra.mxu1 %v1331_v14  ;;  %1833 = vmatprep.subr.mxu0 %v3136_v1  ;;  %v1348_v14 = vld [vmem:[#allocation2 + $0x3a8] sm:$0xff] }
  0xda   : > { %2712 = vmatmul.mubr.msk.f32.gmra.mxu0 %vm527_vm2, %v3137_v43  ;;  %2776 = vmatmul.mubr.msk.f32.gmra.mxu1 %vm529_vm3, %v3137_v43  ;;  %vm559_vm2 = vcmp.eq.s32.totalorder %v3593_v24, %v3341_v36  ;;  %vm561_vm3 = vcmp.eq.s32.totalorder %v3593_v24, %v3350_v39 }
  0xdb   : > { %1834 = vmatpush1.msra.mxu0 %v1298_v16  ;;  %2713 = vmatprep.mubr.msk.f32.mxu0 %vm536_vm4, %v3137_v43  ;;  %vm568_vm4 = vcmp.eq.s32.totalorder %v3609_v27, %v3344_v37  ;;  %v3753_v7 = vpop.permute.xlu0 %414  ;;  %v3769_v11 = vpop.permute.xlu1 %417 }
  0xdc   : > { %2777 = vmatprep.mubr.msk.f32.mxu1 %vm538_vm5, %v3137_v43  ;;  %2058 = vmatprep.subr.mxu1 %v3136_v1  ;;  %vm570_vm5 = vcmp.eq.s32.totalorder %v3609_v27, %v3347_v38 }
  0xdd   : > { %2059 = vmatpush1.msra.mxu1 %v1330_v17  ;;  %1835 = vmatprep.subr.mxu0 %v3136_v1  ;;  %v1315_v17 = vld [vmem:[#allocation2 + $0x2a0] sm:$0xff] }
  0xde   : > { %2714 = vmatmul.mubr.msk.f32.gmra.mxu0 %vm535_vm6, %v3137_v43  ;;  %2778 = vmatmul.mubr.msk.f32.gmra.mxu1 %vm537_vm7, %v3137_v43  ;;  %vm567_vm6 = vcmp.eq.s32.totalorder %v3609_v27, %v3341_v36  ;;  %vm569_vm7 = vcmp.eq.s32.totalorder %v3609_v27, %v3350_v39 }
  0xdf   : > { %1836 = vmatpush1.msra.mxu0 %v1297_v19  ;;  %2715 = vmatprep.mubr.msk.f32.mxu0 %vm544_vm8, %v3137_v43  ;;  %vm576_vm8 = vcmp.eq.s32.totalorder %v3625_v30, %v3344_v37  ;;  %v3785_v16 = vpop.permute.xlu0 %420  ;;  %v1347_v19 = vld [vmem:[#allocation2 + $0x3a0] sm:$0xff] }
  0xe0   : > { %2779 = vmatprep.mubr.msk.f32.mxu1 %vm546_vm9, %v3137_v43  ;;  %2060 = vmatprep.subr.mxu1 %v3136_v1  ;;  %vm578_vm9 = vcmp.eq.s32.totalorder %v3625_v30, %v3347_v38 }
  0xe1   : > { %2061 = vmatpush1.msra.mxu1 %v1329_v20  ;;  %1837 = vmatprep.subr.mxu0 %v3136_v1  ;;  %v3801_v20 = vpop.permute.xlu1 %423 }
  0xe2   : > { %2716 = vmatmul.mubr.msk.f32.gmra.mxu0 %vm543_vm10, %v3137_v43  ;;  %2780 = vmatmul.mubr.msk.f32.gmra.mxu1 %vm545_vm11, %v3137_v43  ;;  %vm575_vm10 = vcmp.eq.s32.totalorder %v3625_v30, %v3341_v36  ;;  %vm577_vm11 = vcmp.eq.s32.totalorder %v3625_v30, %v3350_v39 }
  0xe3   : > { %1838 = vmatpush1.msra.mxu0 %v1296_v22  ;;  %2717 = vmatprep.mubr.msk.f32.mxu0 %vm552_vm12, %v3137_v43  ;;  %vm584_vm12 = vcmp.eq.s32.totalorder %v3641_v33, %v3344_v37  ;;  %v1314_v22 = vld [vmem:[#allocation2 + $0x298] sm:$0xff] }
  0xe4   : > { %2781 = vmatprep.mubr.msk.f32.mxu1 %vm554_vm13, %v3137_v43  ;;  %2062 = vmatprep.subr.mxu1 %v3136_v1  ;;  %vm586_vm13 = vcmp.eq.s32.totalorder %v3641_v33, %v3347_v38 }
  0xe5   : > { %2063 = vmatpush1.msra.mxu1 %v1328_v23  ;;  %1839 = vmatprep.subr.mxu0 %v3136_v1  ;;  %v1346_v23 = vld [vmem:[#allocation2 + $0x398] sm:$0xff] }
  0xe6   : > { %2718 = vmatmul.mubr.msk.f32.gmra.mxu0 %vm551_vm14, %v3137_v43  ;;  %2782 = vmatmul.mubr.msk.f32.gmra.mxu1 %vm553_vm15, %v3137_v43  ;;  %vm583_vm14 = vcmp.eq.s32.totalorder %v3641_v33, %v3341_v36  ;;  %vm585_vm15 = vcmp.eq.s32.totalorder %v3641_v33, %v3350_v39 }
  0xe7   : > { %1840 = vmatpush1.msra.mxu0 %v1295_v25  ;;  %2719 = vmatprep.mubr.msk.f32.mxu0 %vm560_vm0, %v3137_v43  ;;  %vm592_vm0 = vcmp.eq.s32.totalorder %v3657_v41, %v3344_v37  ;;  %v3817_v25 = vpop.permute.xlu0 %426 }
  0xe8   : > { %2783 = vmatprep.mubr.msk.f32.mxu1 %vm562_vm1, %v3137_v43  ;;  %2064 = vmatprep.subr.mxu1 %v3136_v1  ;;  %vm594_vm1 = vcmp.eq.s32.totalorder %v3657_v41, %v3347_v38 }
  0xe9   : > { %2065 = vmatpush1.msra.mxu1 %v1327_v26  ;;  %1841 = vmatprep.subr.mxu0 %v3136_v1  ;;  %v1313_v26 = vld [vmem:[#allocation2 + $0x290] sm:$0xff] }
  0xea   : > { %2720 = vmatmul.mubr.msk.f32.gmra.mxu0 %vm559_vm2, %v3137_v43  ;;  %2784 = vmatmul.mubr.msk.f32.gmra.mxu1 %vm561_vm3, %v3137_v43  ;;  %vm591_vm2 = vcmp.eq.s32.totalorder %v3657_v41, %v3341_v36  ;;  %vm593_vm3 = vcmp.eq.s32.totalorder %v3657_v41, %v3350_v39 }
  0xeb   : > { %1842 = vmatpush2.msra.mxu0 %v1326_v28  ;;  %2721 = vmatprep.mubr.msk.f32.mxu0 %vm568_vm4, %v3137_v43  ;;  %vm600_vm4 = vcmp.eq.s32.totalorder %v3673_v47, %v3344_v37  ;;  %v1345_v28 = vld [vmem:[#allocation2 + $0x390] sm:$0xff] }
  0xec   : > { %2785 = vmatprep.mubr.msk.f32.mxu1 %vm570_vm5, %v3137_v43  ;;  %2066 = vmatprep.subr.mxu1 %v3136_v1  ;;  %vm602_vm5 = vcmp.eq.s32.totalorder %v3673_v47, %v3347_v38 }
  0xed   : > { %2067 = vmatpush2.msra.mxu1 %v1358_v29  ;;  %1843 = vmatprep.subr.mxu0 %v3136_v1  ;;  %v3833_v29 = vpop.permute.xlu1 %429 }
  0xee   : > { %2722 = vmatmul.mubr.msk.f32.gmra.mxu0 %vm567_vm6, %v3137_v43  ;;  %2786 = vmatmul.mubr.msk.f32.gmra.mxu1 %vm569_vm7, %v3137_v43  ;;  %vm599_vm6 = vcmp.eq.s32.totalorder %v3673_v47, %v3341_v36  ;;  %vm601_vm7 = vcmp.eq.s32.totalorder %v3673_v47, %v3350_v39 }
  0xef   : > { %1844 = vmatpush2.msra.mxu0 %v1325_v31  ;;  %2723 = vmatprep.mubr.msk.f32.mxu0 %vm576_vm8, %v3137_v43  ;;  %vm608_vm8 = vcmp.eq.s32.totalorder %v3689_v52, %v3344_v37  ;;  %v1312_v31 = vld [vmem:[#allocation2 + $0x288] sm:$0xff] }
  0xf0   : > { %2787 = vmatprep.mubr.msk.f32.mxu1 %vm578_vm9, %v3137_v43  ;;  %2068 = vmatprep.subr.mxu1 %v3136_v1  ;;  %vm610_vm9 = vcmp.eq.s32.totalorder %v3689_v52, %v3347_v38 }
  0xf1   : > { %2069 = vmatpush2.msra.mxu1 %v1357_v32  ;;  %1845 = vmatprep.subr.mxu0 %v3136_v1  ;;  %v1344_v32 = vld [vmem:[#allocation2 + $0x388] sm:$0xff] }
  0xf2   : > { %2724 = vmatmul.mubr.msk.f32.gmra.mxu0 %vm575_vm10, %v3137_v43  ;;  %2788 = vmatmul.mubr.msk.f32.gmra.mxu1 %vm577_vm11, %v3137_v43  ;;  %vm607_vm10 = vcmp.eq.s32.totalorder %v3689_v52, %v3341_v36  ;;  %vm609_vm11 = vcmp.eq.s32.totalorder %v3689_v52, %v3350_v39 }
  0xf3   : > { %1846 = vmatpush2.msra.mxu0 %v1324_v34  ;;  %2725 = vmatprep.mubr.msk.f32.mxu0 %vm584_vm12, %v3137_v43  ;;  %vm616_vm12 = vcmp.eq.s32.totalorder %v3705_v56, %v3344_v37  ;;  %v3850_v34 = vadd.s32 640, %v3341_v36 }
  0xf4   : > { %2789 = vmatprep.mubr.msk.f32.mxu1 %vm586_vm13, %v3137_v43  ;;  %2070 = vmatprep.subr.mxu1 %v3136_v1  ;;  %vm618_vm13 = vcmp.eq.s32.totalorder %v3705_v56, %v3347_v38 }
  0xf5   : > { %2071 = vmatpush2.msra.mxu1 %v1356_v35  ;;  %1847 = vmatprep.subr.mxu0 %v3136_v1  ;;  %v3856_v35 = vadd.s32 896, %v3341_v36 }
  0xf6   : > { %2726 = vmatmul.mubr.msk.f32.gmra.mxu0 %vm583_vm14, %v3137_v43  ;;  %2790 = vmatmul.mubr.msk.f32.gmra.mxu1 %vm585_vm15, %v3137_v43  ;;  %vm615_vm14 = vcmp.eq.s32.totalorder %v3705_v56, %v3341_v36  ;;  %vm617_vm15 = vcmp.eq.s32.totalorder %v3705_v56, %v3350_v39 }
  0xf7   : > { %1848 = vmatpush2.msra.mxu0 %v1323_v42  ;;  %2727 = vmatprep.mubr.msk.f32.mxu0 %vm592_vm0, %v3137_v43  ;;  %vm624_vm0 = vcmp.eq.s32.totalorder %v3721_v61, %v3344_v37  ;;  %v1311_v42 = vld [vmem:[#allocation2 + $0x280] sm:$0xff] }
  0xf8   : > { %2791 = vmatprep.mubr.msk.f32.mxu1 %vm594_vm1, %v3137_v43  ;;  %2072 = vmatprep.subr.mxu1 %v3136_v1  ;;  %vm626_vm1 = vcmp.eq.s32.totalorder %v3721_v61, %v3347_v38 }
  0xf9   : > { %2073 = vmatpush2.msra.mxu1 %v1355_v46  ;;  %1849 = vmatprep.subr.mxu0 %v3136_v1  ;;  %v1343_v46 = vld [vmem:[#allocation2 + $0x380] sm:$0xff] }
  0xfa   : > { %2728 = vmatmul.mubr.msk.f32.gmra.mxu0 %vm591_vm2, %v3137_v43  ;;  %2792 = vmatmul.mubr.msk.f32.gmra.mxu1 %vm593_vm3, %v3137_v43  ;;  %vm623_vm2 = vcmp.eq.s32.totalorder %v3721_v61, %v3341_v36  ;;  %vm625_vm3 = vcmp.eq.s32.totalorder %v3721_v61, %v3350_v39 }
  0xfb   : > { %1850 = vmatpush2.msra.mxu0 %v1322_v48  ;;  %2729 = vmatprep.mubr.msk.f32.mxu0 %vm600_vm4, %v3137_v43  ;;  %vm632_vm4 = vcmp.eq.s32.totalorder %v3737_v2, %v3344_v37 }
  0xfc   : > { %2793 = vmatprep.mubr.msk.f32.mxu1 %vm602_vm5, %v3137_v43  ;;  %2074 = vmatprep.subr.mxu1 %v3136_v1  ;;  %vm634_vm5 = vcmp.eq.s32.totalorder %v3737_v2, %v3347_v38 }
  0xfd   : > { %2075 = vmatpush2.msra.mxu1 %v1354_v50  ;;  %1851 = vmatprep.subr.mxu0 %v3136_v1 }
  0xfe   : > { %2730 = vmatmul.mubr.msk.f32.gmra.mxu0 %vm599_vm6, %v3137_v43  ;;  %2794 = vmatmul.mubr.msk.f32.gmra.mxu1 %vm601_vm7, %v3137_v43  ;;  %vm631_vm6 = vcmp.eq.s32.totalorder %v3737_v2, %v3341_v36  ;;  %vm633_vm7 = vcmp.eq.s32.totalorder %v3737_v2, %v3350_v39 }
  0xff   : > { %1852 = vmatpush2.msra.mxu0 %v1321_v53  ;;  %2731 = vmatprep.mubr.msk.f32.mxu0 %vm608_vm8, %v3137_v43  ;;  %vm640_vm8 = vcmp.eq.s32.totalorder %v3753_v7, %v3344_v37 }
 0x100   : > { %2795 = vmatprep.mubr.msk.f32.mxu1 %vm610_vm9, %v3137_v43  ;;  %2076 = vmatprep.subr.mxu1 %v3136_v1  ;;  %vm642_vm9 = vcmp.eq.s32.totalorder %v3753_v7, %v3347_v38 }
 0x101   : > { %2077 = vmatpush2.msra.mxu1 %v1353_v55  ;;  %1853 = vmatprep.subr.mxu0 %v3136_v1 }
 0x102   : > { %2732 = vmatmul.mubr.msk.f32.gmra.mxu0 %vm607_vm10, %v3137_v43  ;;  %2796 = vmatmul.mubr.msk.f32.gmra.mxu1 %vm609_vm11, %v3137_v43  ;;  %vm639_vm10 = vcmp.eq.s32.totalorder %v3753_v7, %v3341_v36  ;;  %vm641_vm11 = vcmp.eq.s32.totalorder %v3753_v7, %v3350_v39 }
 0x103   : > { %1854 = vmatpush2.msra.mxu0 %v1320_v58  ;;  %2733 = vmatprep.mubr.msk.f32.mxu0 %vm616_vm12, %v3137_v43  ;;  %vm648_vm12 = vcmp.eq.s32.totalorder %v3769_v11, %v3344_v37 }
 0x104   : > { %2797 = vmatprep.mubr.msk.f32.mxu1 %vm618_vm13, %v3137_v43  ;;  %2078 = vmatprep.subr.mxu1 %v3136_v1  ;;  %vm650_vm13 = vcmp.eq.s32.totalorder %v3769_v11, %v3347_v38 }
 0x105   : > { %2079 = vmatpush2.msra.mxu1 %v1352_v59  ;;  %1855 = vmatprep.subr.mxu0 %v3136_v1 }
 0x106   : > { %2734 = vmatmul.mubr.msk.f32.gmra.mxu0 %vm615_vm14, %v3137_v43  ;;  %2798 = vmatmul.mubr.msk.f32.gmra.mxu1 %vm617_vm15, %v3137_v43  ;;  %vm647_vm14 = vcmp.eq.s32.totalorder %v3769_v11, %v3341_v36  ;;  %vm649_vm15 = vcmp.eq.s32.totalorder %v3769_v11, %v3350_v39 }
 0x107   : > { %1856 = vmatpush2.msra.mxu0 %v1319_v62  ;;  %2735 = vmatprep.mubr.msk.f32.mxu0 %vm624_vm0, %v3137_v43  ;;  %vm656_vm0 = vcmp.eq.s32.totalorder %v3785_v16, %v3344_v37 }
 0x108   : > { %2799 = vmatprep.mubr.msk.f32.mxu1 %vm626_vm1, %v3137_v43  ;;  %2080 = vmatprep.subr.mxu1 %v3136_v1  ;;  %vm658_vm1 = vcmp.eq.s32.totalorder %v3785_v16, %v3347_v38 }
 0x109   : > { %2081 = vmatpush2.msra.mxu1 %v1351_v0  ;;  %1857 = vmatprep.subr.mxu0 %v3136_v1 }
 0x10a   : > { %2736 = vmatmul.mubr.msk.f32.gmra.mxu0 %vm623_vm2, %v3137_v43  ;;  %2800 = vmatmul.mubr.msk.f32.gmra.mxu1 %vm625_vm3, %v3137_v43  ;;  %vm655_vm2 = vcmp.eq.s32.totalorder %v3785_v16, %v3341_v36  ;;  %vm657_vm3 = vcmp.eq.s32.totalorder %v3785_v16, %v3350_v39 }
 0x10b   : > { %1858 = vmatpush2.msra.mxu0 %v1318_v4  ;;  %2737 = vmatprep.mubr.msk.f32.mxu0 %vm632_vm4, %v3137_v43  ;;  %vm664_vm4 = vcmp.eq.s32.totalorder %v3801_v20, %v3344_v37 }
 0x10c   : > { %2801 = vmatprep.mubr.msk.f32.mxu1 %vm634_vm5, %v3137_v43  ;;  %2082 = vmatprep.subr.mxu1 %v3136_v1  ;;  %vm666_vm5 = vcmp.eq.s32.totalorder %v3801_v20, %v3347_v38 }
 0x10d   : > { %2083 = vmatpush2.msra.mxu1 %v1350_v5  ;;  %1859 = vmatprep.subr.mxu0 %v3136_v1 }
 0x10e   : > { %2738 = vmatmul.mubr.msk.f32.gmra.mxu0 %vm631_vm6, %v3137_v43  ;;  %2802 = vmatmul.mubr.msk.f32.gmra.mxu1 %vm633_vm7, %v3137_v43  ;;  %vm663_vm6 = vcmp.eq.s32.totalorder %v3801_v20, %v3341_v36  ;;  %vm665_vm7 = vcmp.eq.s32.totalorder %v3801_v20, %v3350_v39 }
 0x10f   : > { %1860 = vmatpush2.msra.mxu0 %v1317_v8  ;;  %2739 = vmatprep.mubr.msk.f32.mxu0 %vm640_vm8, %v3137_v43  ;;  %vm672_vm8 = vcmp.eq.s32.totalorder %v3817_v25, %v3344_v37 }
 0x110   : > { %2803 = vmatprep.mubr.msk.f32.mxu1 %vm642_vm9, %v3137_v43  ;;  %2084 = vmatprep.subr.mxu1 %v3136_v1  ;;  %vm674_vm9 = vcmp.eq.s32.totalorder %v3817_v25, %v3347_v38 }
 0x111   : > { %2085 = vmatpush2.msra.mxu1 %v1349_v10  ;;  %1861 = vmatprep.subr.mxu0 %v3136_v1 }
 0x112   : > { %2740 = vmatmul.mubr.msk.f32.gmra.mxu0 %vm639_vm10, %v3137_v43  ;;  %2804 = vmatmul.mubr.msk.f32.gmra.mxu1 %vm641_vm11, %v3137_v43  ;;  %vm671_vm10 = vcmp.eq.s32.totalorder %v3817_v25, %v3341_v36  ;;  %vm673_vm11 = vcmp.eq.s32.totalorder %v3817_v25, %v3350_v39 }
 0x113   : > { %1862 = vmatpush2.msra.mxu0 %v1316_v13  ;;  %2741 = vmatprep.mubr.msk.f32.mxu0 %vm648_vm12, %v3137_v43  ;;  %vm680_vm12 = vcmp.eq.s32.totalorder %v3833_v29, %v3344_v37  ;;  %v3866_v37 = vadd.s32 512, %v3341_v36 }
 0x114   : > { %2805 = vmatprep.mubr.msk.f32.mxu1 %vm650_vm13, %v3137_v43  ;;  %2086 = vmatprep.subr.mxu1 %v3136_v1  ;;  %vm682_vm13 = vcmp.eq.s32.totalorder %v3833_v29, %v3347_v38  ;;  %v3869_v38 = vadd.s32 768, %v3341_v36 }
 0x115   : > { %2087 = vmatpush2.msra.mxu1 %v1348_v14  ;;  %1863 = vmatprep.subr.mxu0 %v3136_v1 }
 0x116   : > { %2742 = vmatmul.mubr.msk.f32.gmra.mxu0 %vm647_vm14, %v3137_v43  ;;  %2806 = vmatmul.mubr.msk.f32.gmra.mxu1 %vm649_vm15, %v3137_v43  ;;  %vm679_vm14 = vcmp.eq.s32.totalorder %v3833_v29, %v3341_v36  ;;  %vm681_vm15 = vcmp.eq.s32.totalorder %v3833_v29, %v3350_v39 }
 0x117   : > { %1864 = vmatpush2.msra.mxu0 %v1315_v17  ;;  %2743 = vmatprep.mubr.msk.f32.mxu0 %vm656_vm0, %v3137_v43  ;;  %vm436_vm0 = vcmp.eq.s32.totalorder %v3352_v40, %v3850_v34 }
 0x118   : > { %2807 = vmatprep.mubr.msk.f32.mxu1 %vm658_vm1, %v3137_v43  ;;  %2088 = vmatprep.subr.mxu1 %v3136_v1  ;;  %vm438_vm1 = vcmp.eq.s32.totalorder %v3352_v40, %v3856_v35 }
 0x119   : > { %2089 = vmatpush2.msra.mxu1 %v1347_v19  ;;  %1865 = vmatprep.subr.mxu0 %v3136_v1 }
 0x11a   : > { %2744 = vmatmul.mubr.msk.f32.gmra.mxu0 %vm655_vm2, %v3137_v43  ;;  %2808 = vmatmul.mubr.msk.f32.gmra.mxu1 %vm657_vm3, %v3137_v43  ;;  %vm435_vm2 = vcmp.eq.s32.totalorder %v3352_v40, %v3866_v37  ;;  %vm437_vm3 = vcmp.eq.s32.totalorder %v3352_v40, %v3869_v38 }
 0x11b   : > { %1866 = vmatpush2.msra.mxu0 %v1314_v22  ;;  %2745 = vmatprep.mubr.msk.f32.mxu0 %vm664_vm4, %v3137_v43  ;;  %vm444_vm4 = vcmp.eq.s32.totalorder %v3368_v45, %v3850_v34 }
 0x11c   : > { %2809 = vmatprep.mubr.msk.f32.mxu1 %vm666_vm5, %v3137_v43  ;;  %2090 = vmatprep.subr.mxu1 %v3136_v1  ;;  %vm446_vm5 = vcmp.eq.s32.totalorder %v3368_v45, %v3856_v35 }
 0x11d   : > { %2091 = vmatpush2.msra.mxu1 %v1346_v23  ;;  %1867 = vmatprep.subr.mxu0 %v3136_v1 }
 0x11e   : > { %2746 = vmatmul.mubr.msk.f32.gmra.mxu0 %vm663_vm6, %v3137_v43  ;;  %2810 = vmatmul.mubr.msk.f32.gmra.mxu1 %vm665_vm7, %v3137_v43  ;;  %vm443_vm6 = vcmp.eq.s32.totalorder %v3368_v45, %v3866_v37  ;;  %vm445_vm7 = vcmp.eq.s32.totalorder %v3368_v45, %v3869_v38 }
 0x11f   : > { %1868 = vmatpush2.msra.mxu0 %v1313_v26  ;;  %2747 = vmatprep.mubr.msk.f32.mxu0 %vm672_vm8, %v3137_v43  ;;  %vm452_vm8 = vcmp.eq.s32.totalorder %v3366_v44, %v3850_v34 }
 0x120   : > { %2811 = vmatprep.mubr.msk.f32.mxu1 %vm674_vm9, %v3137_v43  ;;  %2092 = vmatprep.subr.mxu1 %v3136_v1  ;;  %vm454_vm9 = vcmp.eq.s32.totalorder %v3366_v44, %v3856_v35 }
 0x121   : > { %2093 = vmatpush2.msra.mxu1 %v1345_v28  ;;  %1869 = vmatprep.subr.mxu0 %v3136_v1 }
 0x122   : > { %2748 = vmatmul.mubr.msk.f32.gmra.mxu0 %vm671_vm10, %v3137_v43  ;;  %2812 = vmatmul.mubr.msk.f32.gmra.mxu1 %vm673_vm11, %v3137_v43  ;;  %vm451_vm10 = vcmp.eq.s32.totalorder %v3366_v44, %v3866_v37  ;;  %vm453_vm11 = vcmp.eq.s32.totalorder %v3366_v44, %v3869_v38 }
 0x123   : > { %1870 = vmatpush2.msra.mxu0 %v1312_v31  ;;  %2749 = vmatprep.mubr.msk.f32.mxu0 %vm680_vm12, %v3137_v43  ;;  %vm460_vm12 = vcmp.eq.s32.totalorder %v3393_v49, %v3850_v34 }
 0x124   : > { %2813 = vmatprep.mubr.msk.f32.mxu1 %vm682_vm13, %v3137_v43  ;;  %2094 = vmatprep.subr.mxu1 %v3136_v1  ;;  %vm462_vm13 = vcmp.eq.s32.totalorder %v3393_v49, %v3856_v35 }
 0x125   : > { %2095 = vmatpush2.msra.mxu1 %v1344_v32  ;;  %1871 = vmatprep.subr.mxu0 %v3136_v1 }
 0x126   : > { %2750 = vmatmul.mubr.msk.f32.gmra.mxu0 %vm679_vm14, %v3137_v43  ;;  %2814 = vmatmul.mubr.msk.f32.gmra.mxu1 %vm681_vm15, %v3137_v43  ;;  %vm459_vm14 = vcmp.eq.s32.totalorder %v3393_v49, %v3866_v37  ;;  %vm461_vm15 = vcmp.eq.s32.totalorder %v3393_v49, %v3869_v38 }
 0x127   : > { %1872 = vmatpush2.msra.mxu0 %v1311_v42  ;;  %2815 = vmatprep.mubr.msk.f32.mxu0 %vm436_vm0, %v3137_v43  ;;  %vm468_vm0 = vcmp.eq.s32.totalorder %v3401_v51, %v3850_v34 }
 0x128   : > { %2096 = vmatprep.subr.mxu1 %v3136_v1  ;;  %2879 = vmatprep.mubr.msk.f32.mxu1 %vm438_vm1, %v3137_v43  ;;  %vm470_vm1 = vcmp.eq.s32.totalorder %v3401_v51, %v3856_v35 }
 0x129   : > { %2097 = vmatpush2.msra.mxu1 %v1343_v46 }
 0x12a   : > { %2816 = vmatmul.mubr.msk.f32.vlgmr.msra.gmra.mxu0 %vm435_vm2, %v3137_v43  ;;  %2880 = vmatmul.mubr.msk.f32.vlgmr.msra.gmra.mxu1 %vm437_vm3, %v3137_v43  ;;  %vm467_vm2 = vcmp.eq.s32.totalorder %v3401_v51, %v3866_v37  ;;  %vm469_vm3 = vcmp.eq.s32.totalorder %v3401_v51, %v3869_v38 }
 0x12b   : > { %2817 = vmatprep.mubr.msk.f32.mxu0 %vm444_vm4, %v3137_v43  ;;  %2881 = vmatprep.mubr.msk.f32.mxu1 %vm446_vm5, %v3137_v43  ;;  %vm476_vm4 = vcmp.eq.s32.totalorder %v3417_v54, %v3850_v34  ;;  %vm478_vm5 = vcmp.eq.s32.totalorder %v3417_v54, %v3856_v35 }
 0x12e   : > { %2818 = vmatmul.mubr.msk.f32.gmra.mxu0 %vm443_vm6, %v3137_v43  ;;  %2882 = vmatmul.mubr.msk.f32.gmra.mxu1 %vm445_vm7, %v3137_v43  ;;  %vm475_vm6 = vcmp.eq.s32.totalorder %v3417_v54, %v3866_v37  ;;  %vm477_vm7 = vcmp.eq.s32.totalorder %v3417_v54, %v3869_v38 }
 0x12f   : > { %2819 = vmatprep.mubr.msk.f32.mxu0 %vm452_vm8, %v3137_v43  ;;  %2883 = vmatprep.mubr.msk.f32.mxu1 %vm454_vm9, %v3137_v43  ;;  %vm484_vm8 = vcmp.eq.s32.totalorder %v3433_v57, %v3850_v34  ;;  %vm486_vm9 = vcmp.eq.s32.totalorder %v3433_v57, %v3856_v35 }
 0x132   : > { %2820 = vmatmul.mubr.msk.f32.gmra.mxu0 %vm451_vm10, %v3137_v43  ;;  %2884 = vmatmul.mubr.msk.f32.gmra.mxu1 %vm453_vm11, %v3137_v43  ;;  %vm483_vm10 = vcmp.eq.s32.totalorder %v3433_v57, %v3866_v37  ;;  %vm485_vm11 = vcmp.eq.s32.totalorder %v3433_v57, %v3869_v38 }
 0x133   : > { %2821 = vmatprep.mubr.msk.f32.mxu0 %vm460_vm12, %v3137_v43  ;;  %2885 = vmatprep.mubr.msk.f32.mxu1 %vm462_vm13, %v3137_v43  ;;  %vm492_vm12 = vcmp.eq.s32.totalorder %v3449_v60, %v3850_v34  ;;  %vm494_vm13 = vcmp.eq.s32.totalorder %v3449_v60, %v3856_v35 }
 0x136   : > { %2822 = vmatmul.mubr.msk.f32.gmra.mxu0 %vm459_vm14, %v3137_v43  ;;  %2886 = vmatmul.mubr.msk.f32.gmra.mxu1 %vm461_vm15, %v3137_v43  ;;  %vm491_vm14 = vcmp.eq.s32.totalorder %v3449_v60, %v3866_v37  ;;  %vm493_vm15 = vcmp.eq.s32.totalorder %v3449_v60, %v3869_v38 }
 0x137   : > { %2823 = vmatprep.mubr.msk.f32.mxu0 %vm468_vm0, %v3137_v43  ;;  %2887 = vmatprep.mubr.msk.f32.mxu1 %vm470_vm1, %v3137_v43  ;;  %vm500_vm0 = vcmp.eq.s32.totalorder %v3465_v63, %v3850_v34  ;;  %vm502_vm1 = vcmp.eq.s32.totalorder %v3465_v63, %v3856_v35 }
 0x13a   : > { %2824 = vmatmul.mubr.msk.f32.gmra.mxu0 %vm467_vm2, %v3137_v43  ;;  %2888 = vmatmul.mubr.msk.f32.gmra.mxu1 %vm469_vm3, %v3137_v43  ;;  %vm499_vm2 = vcmp.eq.s32.totalorder %v3465_v63, %v3866_v37  ;;  %vm501_vm3 = vcmp.eq.s32.totalorder %v3465_v63, %v3869_v38 }
 0x13b   : > { %2825 = vmatprep.mubr.msk.f32.mxu0 %vm476_vm4, %v3137_v43  ;;  %2889 = vmatprep.mubr.msk.f32.mxu1 %vm478_vm5, %v3137_v43  ;;  %vm508_vm4 = vcmp.eq.s32.totalorder %v3481_v3, %v3850_v34  ;;  %vm510_vm5 = vcmp.eq.s32.totalorder %v3481_v3, %v3856_v35 }
 0x13e   : > { %2826 = vmatmul.mubr.msk.f32.gmra.mxu0 %vm475_vm6, %v3137_v43  ;;  %2890 = vmatmul.mubr.msk.f32.gmra.mxu1 %vm477_vm7, %v3137_v43  ;;  %vm507_vm6 = vcmp.eq.s32.totalorder %v3481_v3, %v3866_v37  ;;  %vm509_vm7 = vcmp.eq.s32.totalorder %v3481_v3, %v3869_v38 }
 0x13f   : > { %2827 = vmatprep.mubr.msk.f32.mxu0 %vm484_vm8, %v3137_v43  ;;  %2891 = vmatprep.mubr.msk.f32.mxu1 %vm486_vm9, %v3137_v43  ;;  %vm516_vm8 = vcmp.eq.s32.totalorder %v3497_v6, %v3850_v34  ;;  %vm518_vm9 = vcmp.eq.s32.totalorder %v3497_v6, %v3856_v35 }
 0x142   : > { %2828 = vmatmul.mubr.msk.f32.gmra.mxu0 %vm483_vm10, %v3137_v43  ;;  %2892 = vmatmul.mubr.msk.f32.gmra.mxu1 %vm485_vm11, %v3137_v43  ;;  %vm515_vm10 = vcmp.eq.s32.totalorder %v3497_v6, %v3866_v37  ;;  %vm517_vm11 = vcmp.eq.s32.totalorder %v3497_v6, %v3869_v38 }
 0x143   : > { %2829 = vmatprep.mubr.msk.f32.mxu0 %vm492_vm12, %v3137_v43  ;;  %2893 = vmatprep.mubr.msk.f32.mxu1 %vm494_vm13, %v3137_v43  ;;  %vm524_vm12 = vcmp.eq.s32.totalorder %v3513_v9, %v3850_v34  ;;  %vm526_vm13 = vcmp.eq.s32.totalorder %v3513_v9, %v3856_v35 }
 0x146   : > { %2830 = vmatmul.mubr.msk.f32.gmra.mxu0 %vm491_vm14, %v3137_v43  ;;  %2894 = vmatmul.mubr.msk.f32.gmra.mxu1 %vm493_vm15, %v3137_v43  ;;  %vm523_vm14 = vcmp.eq.s32.totalorder %v3513_v9, %v3866_v37  ;;  %vm525_vm15 = vcmp.eq.s32.totalorder %v3513_v9, %v3869_v38 }
 0x147   : > { %2831 = vmatprep.mubr.msk.f32.mxu0 %vm500_vm0, %v3137_v43  ;;  %2895 = vmatprep.mubr.msk.f32.mxu1 %vm502_vm1, %v3137_v43  ;;  %vm532_vm0 = vcmp.eq.s32.totalorder %v3529_v12, %v3850_v34  ;;  %vm534_vm1 = vcmp.eq.s32.totalorder %v3529_v12, %v3856_v35 }
 0x14a   : > { %2832 = vmatmul.mubr.msk.f32.gmra.mxu0 %vm499_vm2, %v3137_v43  ;;  %2896 = vmatmul.mubr.msk.f32.gmra.mxu1 %vm501_vm3, %v3137_v43  ;;  %vm531_vm2 = vcmp.eq.s32.totalorder %v3529_v12, %v3866_v37  ;;  %vm533_vm3 = vcmp.eq.s32.totalorder %v3529_v12, %v3869_v38 }
 0x14b   : > { %2833 = vmatprep.mubr.msk.f32.mxu0 %vm508_vm4, %v3137_v43  ;;  %2897 = vmatprep.mubr.msk.f32.mxu1 %vm510_vm5, %v3137_v43  ;;  %vm540_vm4 = vcmp.eq.s32.totalorder %v3545_v15, %v3850_v34  ;;  %vm542_vm5 = vcmp.eq.s32.totalorder %v3545_v15, %v3856_v35 }
 0x14e   : > { %2834 = vmatmul.mubr.msk.f32.gmra.mxu0 %vm507_vm6, %v3137_v43  ;;  %2898 = vmatmul.mubr.msk.f32.gmra.mxu1 %vm509_vm7, %v3137_v43  ;;  %vm539_vm6 = vcmp.eq.s32.totalorder %v3545_v15, %v3866_v37  ;;  %vm541_vm7 = vcmp.eq.s32.totalorder %v3545_v15, %v3869_v38 }
 0x14f   : > { %2835 = vmatprep.mubr.msk.f32.mxu0 %vm516_vm8, %v3137_v43  ;;  %2899 = vmatprep.mubr.msk.f32.mxu1 %vm518_vm9, %v3137_v43  ;;  %vm548_vm8 = vcmp.eq.s32.totalorder %v3561_v18, %v3850_v34  ;;  %vm550_vm9 = vcmp.eq.s32.totalorder %v3561_v18, %v3856_v35 }
 0x152   : > { %2836 = vmatmul.mubr.msk.f32.gmra.mxu0 %vm515_vm10, %v3137_v43  ;;  %2900 = vmatmul.mubr.msk.f32.gmra.mxu1 %vm517_vm11, %v3137_v43  ;;  %vm547_vm10 = vcmp.eq.s32.totalorder %v3561_v18, %v3866_v37  ;;  %vm549_vm11 = vcmp.eq.s32.totalorder %v3561_v18, %v3869_v38 }
 0x153   : > { %2837 = vmatprep.mubr.msk.f32.mxu0 %vm524_vm12, %v3137_v43  ;;  %2901 = vmatprep.mubr.msk.f32.mxu1 %vm526_vm13, %v3137_v43  ;;  %vm556_vm12 = vcmp.eq.s32.totalorder %v3577_v21, %v3850_v34  ;;  %vm558_vm13 = vcmp.eq.s32.totalorder %v3577_v21, %v3856_v35 }
 0x156   : > { %2838 = vmatmul.mubr.msk.f32.gmra.mxu0 %vm523_vm14, %v3137_v43  ;;  %2902 = vmatmul.mubr.msk.f32.gmra.mxu1 %vm525_vm15, %v3137_v43  ;;  %vm555_vm14 = vcmp.eq.s32.totalorder %v3577_v21, %v3866_v37  ;;  %vm557_vm15 = vcmp.eq.s32.totalorder %v3577_v21, %v3869_v38 }
 0x157   : > { %2839 = vmatprep.mubr.msk.f32.mxu0 %vm532_vm0, %v3137_v43  ;;  %2903 = vmatprep.mubr.msk.f32.mxu1 %vm534_vm1, %v3137_v43  ;;  %vm564_vm0 = vcmp.eq.s32.totalorder %v3593_v24, %v3850_v34  ;;  %vm566_vm1 = vcmp.eq.s32.totalorder %v3593_v24, %v3856_v35 }
 0x15a   : > { %2840 = vmatmul.mubr.msk.f32.gmra.mxu0 %vm531_vm2, %v3137_v43  ;;  %2904 = vmatmul.mubr.msk.f32.gmra.mxu1 %vm533_vm3, %v3137_v43  ;;  %vm563_vm2 = vcmp.eq.s32.totalorder %v3593_v24, %v3866_v37  ;;  %vm565_vm3 = vcmp.eq.s32.totalorder %v3593_v24, %v3869_v38 }
 0x15b   : > { %2841 = vmatprep.mubr.msk.f32.mxu0 %vm540_vm4, %v3137_v43  ;;  %2905 = vmatprep.mubr.msk.f32.mxu1 %vm542_vm5, %v3137_v43  ;;  %vm572_vm4 = vcmp.eq.s32.totalorder %v3609_v27, %v3850_v34  ;;  %vm574_vm5 = vcmp.eq.s32.totalorder %v3609_v27, %v3856_v35 }
 0x15e   : > { %2842 = vmatmul.mubr.msk.f32.gmra.mxu0 %vm539_vm6, %v3137_v43  ;;  %2906 = vmatmul.mubr.msk.f32.gmra.mxu1 %vm541_vm7, %v3137_v43  ;;  %vm571_vm6 = vcmp.eq.s32.totalorder %v3609_v27, %v3866_v37  ;;  %vm573_vm7 = vcmp.eq.s32.totalorder %v3609_v27, %v3869_v38 }
 0x15f   : > { %2843 = vmatprep.mubr.msk.f32.mxu0 %vm548_vm8, %v3137_v43  ;;  %2907 = vmatprep.mubr.msk.f32.mxu1 %vm550_vm9, %v3137_v43  ;;  %vm580_vm8 = vcmp.eq.s32.totalorder %v3625_v30, %v3850_v34  ;;  %vm582_vm9 = vcmp.eq.s32.totalorder %v3625_v30, %v3856_v35 }
 0x162   : > { %2844 = vmatmul.mubr.msk.f32.gmra.mxu0 %vm547_vm10, %v3137_v43  ;;  %2908 = vmatmul.mubr.msk.f32.gmra.mxu1 %vm549_vm11, %v3137_v43  ;;  %vm579_vm10 = vcmp.eq.s32.totalorder %v3625_v30, %v3866_v37  ;;  %vm581_vm11 = vcmp.eq.s32.totalorder %v3625_v30, %v3869_v38 }
 0x163   : > { %2845 = vmatprep.mubr.msk.f32.mxu0 %vm556_vm12, %v3137_v43  ;;  %2909 = vmatprep.mubr.msk.f32.mxu1 %vm558_vm13, %v3137_v43  ;;  %vm588_vm12 = vcmp.eq.s32.totalorder %v3641_v33, %v3850_v34  ;;  %vm590_vm13 = vcmp.eq.s32.totalorder %v3641_v33, %v3856_v35 }
 0x166   : > { %2846 = vmatmul.mubr.msk.f32.gmra.mxu0 %vm555_vm14, %v3137_v43  ;;  %2910 = vmatmul.mubr.msk.f32.gmra.mxu1 %vm557_vm15, %v3137_v43  ;;  %vm587_vm14 = vcmp.eq.s32.totalorder %v3641_v33, %v3866_v37  ;;  %vm589_vm15 = vcmp.eq.s32.totalorder %v3641_v33, %v3869_v38 }
 0x167   : > { %2847 = vmatprep.mubr.msk.f32.mxu0 %vm564_vm0, %v3137_v43  ;;  %2911 = vmatprep.mubr.msk.f32.mxu1 %vm566_vm1, %v3137_v43  ;;  %vm596_vm0 = vcmp.eq.s32.totalorder %v3657_v41, %v3850_v34  ;;  %vm598_vm1 = vcmp.eq.s32.totalorder %v3657_v41, %v3856_v35 }
 0x16a   : > { %v1425_v1 = vpop.f32.mrf.mxu0  ;;  %v1650_v36 = vpop.f32.mrf.mxu1  ;;  %2848 = vmatmul.mubr.msk.f32.gmra.mxu0 %vm563_vm2, %v3137_v43  ;;  %2912 = vmatmul.mubr.msk.f32.gmra.mxu1 %vm565_vm3, %v3137_v43  ;;  %vm595_vm2 = vcmp.eq.s32.totalorder %v3657_v41, %v3866_v37  ;;  %vm597_vm3 = vcmp.eq.s32.totalorder %v3657_v41, %v3869_v38 }
 0x16b   : > { %v4082_v39 = vadd.f32 %v1650_v36, %v1425_v1  ;;  %2849 = vmatprep.mubr.msk.f32.mxu0 %vm572_vm4, %v3137_v43  ;;  %2913 = vmatprep.mubr.msk.f32.mxu1 %vm574_vm5, %v3137_v43  ;;  %vm604_vm4 = vcmp.eq.s32.totalorder %v3673_v47, %v3850_v34  ;;  %vm606_vm5 = vcmp.eq.s32.totalorder %v3673_v47, %v3856_v35 }
 0x16c   : > { %v1427_v40 = vpop.f32.mrf.mxu0  ;;  %v1652_v44 = vpop.f32.mrf.mxu1 }
 0x16e   : > { %v1430_v45 = vpop.f32.mrf.mxu0  ;;  %v1655_v49 = vpop.f32.mrf.mxu1  ;;  %2850 = vmatmul.mubr.msk.f32.gmra.mxu0 %vm571_vm6, %v3137_v43  ;;  %2914 = vmatmul.mubr.msk.f32.gmra.mxu1 %vm573_vm7, %v3137_v43  ;;  %vm603_vm6 = vcmp.eq.s32.totalorder %v3673_v47, %v3866_v37  ;;  %vm605_vm7 = vcmp.eq.s32.totalorder %v3673_v47, %v3869_v38 }
 0x16f   : > { %v4096_v51 = vadd.f32 %v1655_v49, %v1430_v45  ;;  %2851 = vmatprep.mubr.msk.f32.mxu0 %vm580_vm8, %v3137_v43  ;;  %2915 = vmatprep.mubr.msk.f32.mxu1 %vm582_vm9, %v3137_v43  ;;  %vm612_vm8 = vcmp.eq.s32.totalorder %v3689_v52, %v3850_v34  ;;  %vm614_vm9 = vcmp.eq.s32.totalorder %v3689_v52, %v3856_v35 }
 0x170   : > { %v1432_v54 = vpop.f32.mrf.mxu0  ;;  %v1657_v57 = vpop.f32.mrf.mxu1 }
 0x172   : > { %v1435_v60 = vpop.f32.mrf.mxu0  ;;  %v1660_v63 = vpop.f32.mrf.mxu1  ;;  %2852 = vmatmul.mubr.msk.f32.gmra.mxu0 %vm579_vm10, %v3137_v43  ;;  %2916 = vmatmul.mubr.msk.f32.gmra.mxu1 %vm581_vm11, %v3137_v43  ;;  %vm611_vm10 = vcmp.eq.s32.totalorder %v3689_v52, %v3866_v37  ;;  %vm613_vm11 = vcmp.eq.s32.totalorder %v3689_v52, %v3869_v38 }
 0x173   : > { %v4110_v3 = vadd.f32 %v1660_v63, %v1435_v60  ;;  %2853 = vmatprep.mubr.msk.f32.mxu0 %vm588_vm12, %v3137_v43  ;;  %2917 = vmatprep.mubr.msk.f32.mxu1 %vm590_vm13, %v3137_v43  ;;  %vm620_vm12 = vcmp.eq.s32.totalorder %v3705_v56, %v3850_v34  ;;  %vm622_vm13 = vcmp.eq.s32.totalorder %v3705_v56, %v3856_v35 }
 0x174   : > { %v1437_v6 = vpop.f32.mrf.mxu0  ;;  %v1662_v9 = vpop.f32.mrf.mxu1 }
 0x176   : > { %v1440_v12 = vpop.f32.mrf.mxu0  ;;  %v1665_v15 = vpop.f32.mrf.mxu1  ;;  %2854 = vmatmul.mubr.msk.f32.gmra.mxu0 %vm587_vm14, %v3137_v43  ;;  %2918 = vmatmul.mubr.msk.f32.gmra.mxu1 %vm589_vm15, %v3137_v43  ;;  %vm619_vm14 = vcmp.eq.s32.totalorder %v3705_v56, %v3866_v37  ;;  %vm621_vm15 = vcmp.eq.s32.totalorder %v3705_v56, %v3869_v38 }
 0x177   : > { %v4124_v18 = vadd.f32 %v1665_v15, %v1440_v12  ;;  %2855 = vmatprep.mubr.msk.f32.mxu0 %vm596_vm0, %v3137_v43  ;;  %2919 = vmatprep.mubr.msk.f32.mxu1 %vm598_vm1, %v3137_v43  ;;  %vm628_vm0 = vcmp.eq.s32.totalorder %v3721_v61, %v3850_v34  ;;  %vm630_vm1 = vcmp.eq.s32.totalorder %v3721_v61, %v3856_v35 }
 0x178   : > { %v1442_v21 = vpop.f32.mrf.mxu0  ;;  %v1667_v24 = vpop.f32.mrf.mxu1 }
 0x17a   : > { %v1445_v27 = vpop.f32.mrf.mxu0  ;;  %v1670_v30 = vpop.f32.mrf.mxu1  ;;  %2856 = vmatmul.mubr.msk.f32.gmra.mxu0 %vm595_vm2, %v3137_v43  ;;  %2920 = vmatmul.mubr.msk.f32.gmra.mxu1 %vm597_vm3, %v3137_v43  ;;  %vm627_vm2 = vcmp.eq.s32.totalorder %v3721_v61, %v3866_v37  ;;  %vm629_vm3 = vcmp.eq.s32.totalorder %v3721_v61, %v3869_v38 }
 0x17b   : > { %v4138_v33 = vadd.f32 %v1670_v30, %v1445_v27  ;;  %2857 = vmatprep.mubr.msk.f32.mxu0 %vm604_vm4, %v3137_v43  ;;  %2921 = vmatprep.mubr.msk.f32.mxu1 %vm606_vm5, %v3137_v43  ;;  %vm636_vm4 = vcmp.eq.s32.totalorder %v3737_v2, %v3850_v34  ;;  %vm638_vm5 = vcmp.eq.s32.totalorder %v3737_v2, %v3856_v35 }
 0x17c   : > { %v1447_v48 = vpop.f32.mrf.mxu0  ;;  %v1672_v41 = vpop.f32.mrf.mxu1 }
 0x17e   : > { %v1450_v50 = vpop.f32.mrf.mxu0  ;;  %v1675_v53 = vpop.f32.mrf.mxu1  ;;  %2858 = vmatmul.mubr.msk.f32.gmra.mxu0 %vm603_vm6, %v3137_v43  ;;  %2922 = vmatmul.mubr.msk.f32.gmra.mxu1 %vm605_vm7, %v3137_v43  ;;  %vm635_vm6 = vcmp.eq.s32.totalorder %v3737_v2, %v3866_v37  ;;  %vm637_vm7 = vcmp.eq.s32.totalorder %v3737_v2, %v3869_v38 }
 0x17f   : > { %v4152_v55 = vadd.f32 %v1675_v53, %v1450_v50  ;;  %2859 = vmatprep.mubr.msk.f32.mxu0 %vm612_vm8, %v3137_v43  ;;  %2923 = vmatprep.mubr.msk.f32.mxu1 %vm614_vm9, %v3137_v43  ;;  %vm644_vm8 = vcmp.eq.s32.totalorder %v3753_v7, %v3850_v34  ;;  %vm646_vm9 = vcmp.eq.s32.totalorder %v3753_v7, %v3856_v35 }
 0x180   : > { %v1452_v58 = vpop.f32.mrf.mxu0  ;;  %v1677_v47 = vpop.f32.mrf.mxu1 }
 0x182   : > { %v1455_v59 = vpop.f32.mrf.mxu0  ;;  %v1680_v62 = vpop.f32.mrf.mxu1  ;;  %2860 = vmatmul.mubr.msk.f32.gmra.mxu0 %vm611_vm10, %v3137_v43  ;;  %2924 = vmatmul.mubr.msk.f32.gmra.mxu1 %vm613_vm11, %v3137_v43  ;;  %vm643_vm10 = vcmp.eq.s32.totalorder %v3753_v7, %v3866_v37  ;;  %vm645_vm11 = vcmp.eq.s32.totalorder %v3753_v7, %v3869_v38 }
 0x183   : > { %v4166_v0 = vadd.f32 %v1680_v62, %v1455_v59  ;;  %2861 = vmatprep.mubr.msk.f32.mxu0 %vm620_vm12, %v3137_v43  ;;  %2925 = vmatprep.mubr.msk.f32.mxu1 %vm622_vm13, %v3137_v43  ;;  %vm652_vm12 = vcmp.eq.s32.totalorder %v3769_v11, %v3850_v34  ;;  %vm654_vm13 = vcmp.eq.s32.totalorder %v3769_v11, %v3856_v35 }
 0x184   : > { %v1457_v4 = vpop.f32.mrf.mxu0  ;;  %v1682_v52 = vpop.f32.mrf.mxu1 }
 0x186   : > { %v1460_v5 = vpop.f32.mrf.mxu0  ;;  %v1685_v8 = vpop.f32.mrf.mxu1  ;;  %2862 = vmatmul.mubr.msk.f32.gmra.mxu0 %vm619_vm14, %v3137_v43  ;;  %2926 = vmatmul.mubr.msk.f32.gmra.mxu1 %vm621_vm15, %v3137_v43  ;;  %vm651_vm14 = vcmp.eq.s32.totalorder %v3769_v11, %v3866_v37  ;;  %vm653_vm15 = vcmp.eq.s32.totalorder %v3769_v11, %v3869_v38 }
 0x187   : > { %v4180_v10 = vadd.f32 %v1685_v8, %v1460_v5  ;;  %2863 = vmatprep.mubr.msk.f32.mxu0 %vm628_vm0, %v3137_v43  ;;  %2927 = vmatprep.mubr.msk.f32.mxu1 %vm630_vm1, %v3137_v43  ;;  %vm660_vm0 = vcmp.eq.s32.totalorder %v3785_v16, %v3850_v34  ;;  %vm662_vm1 = vcmp.eq.s32.totalorder %v3785_v16, %v3856_v35 }
 0x188   : > { %v1462_v13 = vpop.f32.mrf.mxu0  ;;  %v1687_v56 = vpop.f32.mrf.mxu1 }
 0x18a   : > { %v1465_v14 = vpop.f32.mrf.mxu0  ;;  %v1690_v17 = vpop.f32.mrf.mxu1  ;;  %2864 = vmatmul.mubr.msk.f32.gmra.mxu0 %vm627_vm2, %v3137_v43  ;;  %2928 = vmatmul.mubr.msk.f32.gmra.mxu1 %vm629_vm3, %v3137_v43  ;;  %vm659_vm2 = vcmp.eq.s32.totalorder %v3785_v16, %v3866_v37  ;;  %vm661_vm3 = vcmp.eq.s32.totalorder %v3785_v16, %v3869_v38 }
 0x18b   : > { %v4194_v19 = vadd.f32 %v1690_v17, %v1465_v14  ;;  %2865 = vmatprep.mubr.msk.f32.mxu0 %vm636_vm4, %v3137_v43  ;;  %2929 = vmatprep.mubr.msk.f32.mxu1 %vm638_vm5, %v3137_v43  ;;  %vm668_vm4 = vcmp.eq.s32.totalorder %v3801_v20, %v3850_v34  ;;  %vm670_vm5 = vcmp.eq.s32.totalorder %v3801_v20, %v3856_v35 }
 0x18c   : > { %v1467_v22 = vpop.f32.mrf.mxu0  ;;  %v1692_v61 = vpop.f32.mrf.mxu1 }
 0x18e   : > { %v1470_v23 = vpop.f32.mrf.mxu0  ;;  %v1695_v26 = vpop.f32.mrf.mxu1  ;;  %2866 = vmatmul.mubr.msk.f32.gmra.mxu0 %vm635_vm6, %v3137_v43  ;;  %2930 = vmatmul.mubr.msk.f32.gmra.mxu1 %vm637_vm7, %v3137_v43  ;;  %vm667_vm6 = vcmp.eq.s32.totalorder %v3801_v20, %v3866_v37  ;;  %vm669_vm7 = vcmp.eq.s32.totalorder %v3801_v20, %v3869_v38 }
 0x18f   : > { %v4208_v28 = vadd.f32 %v1695_v26, %v1470_v23  ;;  %2867 = vmatprep.mubr.msk.f32.mxu0 %vm644_vm8, %v3137_v43  ;;  %2931 = vmatprep.mubr.msk.f32.mxu1 %vm646_vm9, %v3137_v43  ;;  %vm676_vm8 = vcmp.eq.s32.totalorder %v3817_v25, %v3850_v34  ;;  %vm678_vm9 = vcmp.eq.s32.totalorder %v3817_v25, %v3856_v35 }
 0x190   : > { %v1472_v31 = vpop.f32.mrf.mxu0  ;;  %v1697_v2 = vpop.f32.mrf.mxu1 }
 0x192   : > { %v1475_v32 = vpop.f32.mrf.mxu0  ;;  %v1700_v42 = vpop.f32.mrf.mxu1  ;;  %2868 = vmatmul.mubr.msk.f32.gmra.mxu0 %vm643_vm10, %v3137_v43  ;;  %2932 = vmatmul.mubr.msk.f32.gmra.mxu1 %vm645_vm11, %v3137_v43  ;;  %vm675_vm10 = vcmp.eq.s32.totalorder %v3817_v25, %v3866_v37  ;;  %vm677_vm11 = vcmp.eq.s32.totalorder %v3817_v25, %v3869_v38 }
 0x193   : > { %v4222_v46 = vadd.f32 %v1700_v42, %v1475_v32  ;;  %2869 = vmatprep.mubr.msk.f32.mxu0 %vm652_vm12, %v3137_v43  ;;  %2933 = vmatprep.mubr.msk.f32.mxu1 %vm654_vm13, %v3137_v43  ;;  %vm684_vm12 = vcmp.eq.s32.totalorder %v3833_v29, %v3850_v34  ;;  %vm686_vm13 = vcmp.eq.s32.totalorder %v3833_v29, %v3856_v35 }
 0x194   : > { %v1477_v1 = vpop.f32.mrf.mxu0  ;;  %v1702_v7 = vpop.f32.mrf.mxu1 }
 0x196   : > { %v1480_v36 = vpop.f32.mrf.mxu0  ;;  %v1705_v40 = vpop.f32.mrf.mxu1  ;;  %2870 = vmatmul.mubr.msk.f32.gmra.mxu0 %vm651_vm14, %v3137_v43  ;;  %2934 = vmatmul.mubr.msk.f32.gmra.mxu1 %vm653_vm15, %v3137_v43  ;;  %vm683_vm14 = vcmp.eq.s32.totalorder %v3833_v29, %v3866_v37  ;;  %vm685_vm15 = vcmp.eq.s32.totalorder %v3833_v29, %v3869_v38 }
 0x197   : > { %v4236_v44 = vadd.f32 %v1705_v40, %v1480_v36  ;;  %2871 = vmatprep.mubr.msk.f32.mxu0 %vm660_vm0, %v3137_v43  ;;  %2935 = vmatprep.mubr.msk.f32.mxu1 %vm662_vm1, %v3137_v43 }
 0x198   : > { %v1482_v45 = vpop.f32.mrf.mxu0  ;;  %v1707_v11 = vpop.f32.mrf.mxu1 }
 0x19a   : > { %v1485_v49 = vpop.f32.mrf.mxu0  ;;  %v1710_v54 = vpop.f32.mrf.mxu1  ;;  %2872 = vmatmul.mubr.msk.f32.gmra.mxu0 %vm659_vm2, %v3137_v43  ;;  %2936 = vmatmul.mubr.msk.f32.gmra.mxu1 %vm661_vm3, %v3137_v43 }
 0x19b   : > { %v4250_v57 = vadd.f32 %v1710_v54, %v1485_v49  ;;  %2873 = vmatprep.mubr.msk.f32.mxu0 %vm668_vm4, %v3137_v43  ;;  %2937 = vmatprep.mubr.msk.f32.mxu1 %vm670_vm5, %v3137_v43 }
 0x19c   : > { %v1487_v60 = vpop.f32.mrf.mxu0  ;;  %v1712_v16 = vpop.f32.mrf.mxu1 }
 0x19e   : > { %v1490_v63 = vpop.f32.mrf.mxu0  ;;  %v1715_v6 = vpop.f32.mrf.mxu1  ;;  %2874 = vmatmul.mubr.msk.f32.gmra.mxu0 %vm667_vm6, %v3137_v43  ;;  %2938 = vmatmul.mubr.msk.f32.gmra.mxu1 %vm669_vm7, %v3137_v43 }
 0x19f   : > { %v4264_v9 = vadd.f32 %v1715_v6, %v1490_v63  ;;  %2875 = vmatprep.mubr.msk.f32.mxu0 %vm676_vm8, %v3137_v43  ;;  %2939 = vmatprep.mubr.msk.f32.mxu1 %vm678_vm9, %v3137_v43 }
 0x1a0   : > { %v1492_v12 = vpop.f32.mrf.mxu0  ;;  %v1717_v20 = vpop.f32.mrf.mxu1 }
 0x1a2   : > { %v1495_v15 = vpop.f32.mrf.mxu0  ;;  %v1720_v21 = vpop.f32.mrf.mxu1  ;;  %2876 = vmatmul.mubr.msk.f32.gmra.mxu0 %vm675_vm10, %v3137_v43  ;;  %2940 = vmatmul.mubr.msk.f32.gmra.mxu1 %vm677_vm11, %v3137_v43 }
 0x1a3   : > { %v4278_v24 = vadd.f32 %v1720_v21, %v1495_v15  ;;  %2877 = vmatprep.mubr.msk.f32.mxu0 %vm684_vm12, %v3137_v43  ;;  %2941 = vmatprep.mubr.msk.f32.mxu1 %vm686_vm13, %v3137_v43 }
 0x1a4   : > { %v1497_v27 = vpop.f32.mrf.mxu0  ;;  %v1722_v25 = vpop.f32.mrf.mxu1 }
 0x1a6   : > { %v1500_v30 = vpop.f32.mrf.mxu0  ;;  %v1725_v48 = vpop.f32.mrf.mxu1  ;;  %2878 = vmatmul.mubr.msk.f32.gmra.mxu0 %vm683_vm14, %v3137_v43  ;;  %2942 = vmatmul.mubr.msk.f32.gmra.mxu1 %vm685_vm15, %v3137_v43 }
 0x1a7   : > { %v4288_v34 = vadd.f32 %v1725_v48, %v1500_v30 }
 0x1a8   : > { %v1502_v35 = vpop.f32.mrf.mxu0  ;;  %v1727_v41 = vpop.f32.mrf.mxu1 }
 0x1aa   : > { %v1505_v50 = vpop.f32.mrf.mxu0  ;;  %v1730_v53 = vpop.f32.mrf.mxu1 }
 0x1ab   : > { %v4290_v58 = vadd.f32 %v1730_v53, %v1505_v50 }
 0x1ac   : > { %v1507_v47 = vpop.f32.mrf.mxu0  ;;  %v1732_v59 = vpop.f32.mrf.mxu1 }
 0x1ae   : > { %v1510_v37 = vpop.f32.mrf.mxu0  ;;  %v1735_v62 = vpop.f32.mrf.mxu1 }
 0x1af   : > { %v4292_v4 = vadd.f32 %v1735_v62, %v1510_v37 }
 0x1b0   : > { %v1512_v29 = vpop.f32.mrf.mxu0  ;;  %v1737_v38 = vpop.f32.mrf.mxu1 }
 0x1b2   : > { %v1515_v52 = vpop.f32.mrf.mxu0  ;;  %v1740_v5 = vpop.f32.mrf.mxu1 }
 0x1b3   : > { %v4294_v8 = vadd.f32 %v1740_v5, %v1515_v52 }
 0x1b4   : > { %v1517_v43 = vpop.f32.mrf.mxu0  ;;  %v1742_v13 = vpop.f32.mrf.mxu1 }
 0x1b6   : > { %v1520_v56 = vpop.f32.mrf.mxu0  ;;  %v1745_v14 = vpop.f32.mrf.mxu1 }
 0x1b7   : > { %v4296_v17 = vadd.f32 %v1745_v14, %v1520_v56 }
 0x1b8   : > { %v1522_v22 = vpop.f32.mrf.mxu0  ;;  %v1747_v61 = vpop.f32.mrf.mxu1 }
 0x1ba   : > { %v1525_v23 = vpop.f32.mrf.mxu0  ;;  %v1750_v26 = vpop.f32.mrf.mxu1 }
 0x1bb   : > { %v4298_v31 = vadd.f32 %v1750_v26, %v1525_v23 }
 0x1bc   : > { %v1527_v2 = vpop.f32.mrf.mxu0  ;;  %v1752_v32 = vpop.f32.mrf.mxu1 }
 0x1be   : > { %v1530_v42 = vpop.f32.mrf.mxu0  ;;  %v1755_v1 = vpop.f32.mrf.mxu1 }
 0x1bf   : > { %v4300_v7 = vadd.f32 %v1755_v1, %v1530_v42 }
 0x1c0   : > { %v1532_v36 = vpop.f32.mrf.mxu0  ;;  %v1757_v40 = vpop.f32.mrf.mxu1 }
 0x1c2   : > { %v1535_v45 = vpop.f32.mrf.mxu0  ;;  %v1760_v11 = vpop.f32.mrf.mxu1 }
 0x1c3   : > { %v4302_v49 = vadd.f32 %v1760_v11, %v1535_v45 }
 0x1c4   : > { %v1537_v54 = vpop.f32.mrf.mxu0  ;;  %v1762_v60 = vpop.f32.mrf.mxu1 }
 0x1c6   : > { %v1540_v16 = vpop.f32.mrf.mxu0  ;;  %v1765_v63 = vpop.f32.mrf.mxu1 }
 0x1c7   : > { %v4304_v6 = vadd.f32 %v1765_v63, %v1540_v16 }
 0x1c8   : > { %v1542_v12 = vpop.f32.mrf.mxu0  ;;  %v1767_v20 = vpop.f32.mrf.mxu1 }
 0x1ca   : > { %v1545_v15 = vpop.f32.mrf.mxu0  ;;  %v1770_v21 = vpop.f32.mrf.mxu1 }
 0x1cb   : > { %v4306_v27 = vadd.f32 %v1770_v21, %v1545_v15 }
 0x1cc   : > { %v1547_v25 = vpop.f32.mrf.mxu0  ;;  %v1772_v30 = vpop.f32.mrf.mxu1 }
 0x1cd   : > { %v4329_v30 = vld [vmem:[%s4561_s2] sm:$0xff] }
 0x1ce   : > { %v1550_v48 = vpop.f32.mrf.mxu0  ;;  %v1775_v35 = vpop.f32.mrf.mxu1 }
 0x1cf   : > { %v4308_v41 = vadd.f32 %v1775_v35, %v1550_v48 }
 0x1d0   : > { %v1552_v50 = vpop.f32.mrf.mxu0  ;;  %v1777_v53 = vpop.f32.mrf.mxu1 }
 0x1d2   : > { %v1555_v47 = vpop.f32.mrf.mxu0  ;;  %v1780_v59 = vpop.f32.mrf.mxu1 }
 0x1d3   : > { %v4310_v37 = vadd.f32 %v1780_v59, %v1555_v47 }
 0x1d4   : > { %v1557_v62 = vpop.f32.mrf.mxu0  ;;  %v1782_v29 = vpop.f32.mrf.mxu1 }
 0x1d6   : > { %v1560_v38 = vpop.f32.mrf.mxu0  ;;  %v1785_v52 = vpop.f32.mrf.mxu1 }
 0x1d7   : > { %v4312_v5 = vadd.f32 %v1785_v52, %v1560_v38 }
 0x1d8   : > { %v1562_v43 = vpop.f32.mrf.mxu0  ;;  %v1787_v13 = vpop.f32.mrf.mxu1 }
 0x1da   : > { %v1565_v56 = vpop.f32.mrf.mxu0  ;;  %v1790_v14 = vpop.f32.mrf.mxu1 }
 0x1db   : > { %v4314_v22 = vadd.f32 %v1790_v14, %v1565_v56  ;;  %v4346_v14 = vld [vmem:[%s4561_s2 + $0x10] sm:$0xff] }
 0x1dc   : > { %v1567_v61 = vpop.f32.mrf.mxu0  ;;  %v1792_v23 = vpop.f32.mrf.mxu1 }
 0x1de   : > { %v1570_v26 = vpop.f32.mrf.mxu0  ;;  %v1795_v2 = vpop.f32.mrf.mxu1 }
 0x1df   : > { %v4316_v32 = vadd.f32 %v1795_v2, %v1570_v26 }
 0x1e0   : > { %v1572_v42 = vpop.f32.mrf.mxu0  ;;  %v1797_v1 = vpop.f32.mrf.mxu1 }
 0x1e2   : > { %v1575_v36 = vpop.f32.mrf.mxu0  ;;  %v1800_v40 = vpop.f32.mrf.mxu1 }
 0x1e3   : > { %v4318_v45 = vadd.f32 %v1800_v40, %v1575_v36 }
 0x1e4   : > { %v1577_v11 = vpop.f32.mrf.mxu0  ;;  %v1802_v54 = vpop.f32.mrf.mxu1 }
 0x1e6   : > { %v1580_v60 = vpop.f32.mrf.mxu0  ;;  %v1805_v16 = vpop.f32.mrf.mxu1 }
 0x1e7   : > { %v4320_v63 = vadd.f32 %v1805_v16, %v1580_v60 }
 0x1e8   : > { %v1582_v12 = vpop.f32.mrf.mxu0  ;;  %v1807_v20 = vpop.f32.mrf.mxu1 }
 0x1ea   : > { %v1875_v15 = vpop.f32.mrf.mxu0  ;;  %v2100_v21 = vpop.f32.mrf.mxu1 }
 0x1eb   : > { %v1876_v25 = vadd.f32 %v1875_v15, %v4082_v39  ;;  %v4336_v39 = vld [vmem:[%s4561_s2 + $0x8] sm:$0xff] }
 0x1ec   : > { %v1877_v48 = vpop.f32.mrf.mxu0  ;;  %v2102_v35 = vpop.f32.mrf.mxu1 }
 0x1ed   : > { %v2101_v50 = vadd.f32 %v2100_v21, %v1876_v25 }
 0x1ee   : > { %v1880_v53 = vpop.f32.mrf.mxu0  ;;  %v2105_v47 = vpop.f32.mrf.mxu1 }
 0x1ef   : > { %v2259_v59 = vadd.f32 %v2101_v50, %v4329_v30  ;;  %v1881_v62 = vadd.f32 %v1880_v53, %v4096_v51 }
 0x1f0   : > { %v1882_v29 = vpop.f32.mrf.mxu0  ;;  %v2107_v38 = vpop.f32.mrf.mxu1 }
 0x1f1   : > { %2291 = vst [vmem:[%s4338_s29] sm:$0xff] %v2259_v59  ;;  %v2106_v52 = vadd.f32 %v2105_v47, %v1881_v62 }
 0x1f2   : > { %v1885_v43 = vpop.f32.mrf.mxu0  ;;  %v2110_v13 = vpop.f32.mrf.mxu1 }
 0x1f3   : > { %v2260_v56 = vadd.f32 %v2106_v52, %v4336_v39  ;;  %v1886_v51 = vadd.f32 %v1885_v43, %v4110_v3  ;;  %v4354_v3 = vld [vmem:[%s4561_s2 + $0x18] sm:$0xff] }
 0x1f4   : > { %v1887_v61 = vpop.f32.mrf.mxu0  ;;  %v2112_v23 = vpop.f32.mrf.mxu1 }
 0x1f5   : > { %2292 = vst [vmem:[%s4338_s29 + $0x8] sm:$0xff] %v2260_v56  ;;  %v2111_v26 = vadd.f32 %v2110_v13, %v1886_v51 }
 0x1f6   : > { %v1890_v2 = vpop.f32.mrf.mxu0  ;;  %v2115_v42 = vpop.f32.mrf.mxu1 }
 0x1f7   : > { %v2261_v1 = vadd.f32 %v2111_v26, %v4346_v14  ;;  %v1891_v36 = vadd.f32 %v1890_v2, %v4124_v18  ;;  %v4362_v18 = vld [vmem:[%s4561_s2 + $0x20] sm:$0xff] }
 0x1f8   : > { %v1892_v40 = vpop.f32.mrf.mxu0  ;;  %v2117_v11 = vpop.f32.mrf.mxu1 }
 0x1f9   : > { %2293 = vst [vmem:[%s4338_s29 + $0x10] sm:$0xff] %v2261_v1  ;;  %v2116_v54 = vadd.f32 %v2115_v42, %v1891_v36 }
 0x1fa   : > { %v1895_v60 = vpop.f32.mrf.mxu0  ;;  %v2120_v16 = vpop.f32.mrf.mxu1 }
 0x1fb   : > { %v2262_v12 = vadd.f32 %v2116_v54, %v4354_v3  ;;  %v1896_v20 = vadd.f32 %v1895_v60, %v4138_v33  ;;  %v4370_v33 = vld [vmem:[%s4561_s2 + $0x28] sm:$0xff] }
 0x1fc   : > { %v1897_v15 = vpop.f32.mrf.mxu0  ;;  %v2122_v21 = vpop.f32.mrf.mxu1 }
 0x1fd   : > { %2294 = vst [vmem:[%s4338_s29 + $0x18] sm:$0xff] %v2262_v12  ;;  %v2121_v25 = vadd.f32 %v2120_v16, %v1896_v20 }
 0x1fe   : > { %v1900_v48 = vpop.f32.mrf.mxu0  ;;  %v2125_v35 = vpop.f32.mrf.mxu1 }
 0x1ff   : > { %v2263_v50 = vadd.f32 %v2121_v25, %v4362_v18  ;;  %v1901_v53 = vadd.f32 %v1900_v48, %v4152_v55  ;;  %v4378_v55 = vld [vmem:[%s4561_s2 + $0x30] sm:$0xff] }
 0x200   : > { %v1902_v47 = vpop.f32.mrf.mxu0  ;;  %v2127_v59 = vpop.f32.mrf.mxu1 }
 0x201   : > { %2295 = vst [vmem:[%s4338_s29 + $0x20] sm:$0xff] %v2263_v50  ;;  %v2126_v62 = vadd.f32 %v2125_v35, %v1901_v53 }
 0x202   : > { %v1905_v29 = vpop.f32.mrf.mxu0  ;;  %v2130_v38 = vpop.f32.mrf.mxu1 }
 0x203   : > { %v2264_v52 = vadd.f32 %v2126_v62, %v4370_v33  ;;  %v1906_v43 = vadd.f32 %v1905_v29, %v4166_v0  ;;  %v4386_v0 = vld [vmem:[%s4561_s2 + $0x38] sm:$0xff] }
 0x204   : > { %v1907_v13 = vpop.f32.mrf.mxu0  ;;  %v2132_v56 = vpop.f32.mrf.mxu1 }
 0x205   : > { %2296 = vst [vmem:[%s4338_s29 + $0x28] sm:$0xff] %v2264_v52  ;;  %v2131_v51 = vadd.f32 %v2130_v38, %v1906_v43 }
 0x206   : > { %v1910_v61 = vpop.f32.mrf.mxu0  ;;  %v2135_v23 = vpop.f32.mrf.mxu1 }
 0x207   : > { %v2265_v26 = vadd.f32 %v2131_v51, %v4378_v55  ;;  %v1911_v2 = vadd.f32 %v1910_v61, %v4180_v10  ;;  %v4394_v10 = vld [vmem:[%s4561_s2 + $0x40] sm:$0xff] }
 0x208   : > { %v1912_v42 = vpop.f32.mrf.mxu0  ;;  %v2137_v1 = vpop.f32.mrf.mxu1 }
 0x209   : > { %2297 = vst [vmem:[%s4338_s29 + $0x30] sm:$0xff] %v2265_v26  ;;  %v2136_v36 = vadd.f32 %v2135_v23, %v1911_v2 }
 0x20a   : > { %v1915_v40 = vpop.f32.mrf.mxu0  ;;  %v2140_v11 = vpop.f32.mrf.mxu1 }
 0x20b   : > { %v2266_v54 = vadd.f32 %v2136_v36, %v4386_v0  ;;  %v1916_v60 = vadd.f32 %v1915_v40, %v4194_v19  ;;  %v4402_v19 = vld [vmem:[%s4561_s2 + $0x48] sm:$0xff] }
 0x20c   : > { %v1917_v16 = vpop.f32.mrf.mxu0  ;;  %v2142_v12 = vpop.f32.mrf.mxu1 }
 0x20d   : > { %2298 = vst [vmem:[%s4338_s29 + $0x38] sm:$0xff] %v2266_v54  ;;  %v2141_v20 = vadd.f32 %v2140_v11, %v1916_v60 }
 0x20e   : > { %v1920_v15 = vpop.f32.mrf.mxu0  ;;  %v2145_v21 = vpop.f32.mrf.mxu1 }
 0x20f   : > { %v2267_v25 = vadd.f32 %v2141_v20, %v4394_v10  ;;  %v1921_v48 = vadd.f32 %v1920_v15, %v4208_v28  ;;  %v4410_v28 = vld [vmem:[%s4561_s2 + $0x50] sm:$0xff] }
 0x210   : > { %v1922_v35 = vpop.f32.mrf.mxu0  ;;  %v2147_v50 = vpop.f32.mrf.mxu1 }
 0x211   : > { %2299 = vst [vmem:[%s4338_s29 + $0x40] sm:$0xff] %v2267_v25  ;;  %v2146_v53 = vadd.f32 %v2145_v21, %v1921_v48 }
 0x212   : > { %v1925_v47 = vpop.f32.mrf.mxu0  ;;  %v2150_v59 = vpop.f32.mrf.mxu1 }
 0x213   : > { %v2268_v62 = vadd.f32 %v2146_v53, %v4402_v19  ;;  %v1926_v29 = vadd.f32 %v1925_v47, %v4222_v46  ;;  %v4418_v46 = vld [vmem:[%s4561_s2 + $0x58] sm:$0xff] }
 0x214   : > { %v1927_v38 = vpop.f32.mrf.mxu0  ;;  %v2152_v52 = vpop.f32.mrf.mxu1 }
 0x215   : > { %2300 = vst [vmem:[%s4338_s29 + $0x48] sm:$0xff] %v2268_v62  ;;  %v2151_v43 = vadd.f32 %v2150_v59, %v1926_v29 }
 0x216   : > { %v1930_v13 = vpop.f32.mrf.mxu0  ;;  %v2155_v56 = vpop.f32.mrf.mxu1 }
 0x217   : > { %v2269_v51 = vadd.f32 %v2151_v43, %v4410_v28  ;;  %v1931_v61 = vadd.f32 %v1930_v13, %v4236_v44  ;;  %v4426_v44 = vld [vmem:[%s4561_s2 + $0x60] sm:$0xff] }
 0x218   : > { %v1932_v23 = vpop.f32.mrf.mxu0  ;;  %v2157_v26 = vpop.f32.mrf.mxu1 }
 0x219   : > { %2301 = vst [vmem:[%s4338_s29 + $0x50] sm:$0xff] %v2269_v51  ;;  %v2156_v2 = vadd.f32 %v2155_v56, %v1931_v61 }
 0x21a   : > { %v1935_v42 = vpop.f32.mrf.mxu0  ;;  %v2160_v1 = vpop.f32.mrf.mxu1 }
 0x21b   : > { %v2270_v36 = vadd.f32 %v2156_v2, %v4418_v46  ;;  %v1936_v40 = vadd.f32 %v1935_v42, %v4250_v57  ;;  %v4434_v57 = vld [vmem:[%s4561_s2 + $0x68] sm:$0xff] }
 0x21c   : > { %v1937_v11 = vpop.f32.mrf.mxu0  ;;  %v2162_v54 = vpop.f32.mrf.mxu1 }
 0x21d   : > { %2302 = vst [vmem:[%s4338_s29 + $0x58] sm:$0xff] %v2270_v36  ;;  %v2161_v60 = vadd.f32 %v2160_v1, %v1936_v40 }
 0x21e   : > { %v1940_v16 = vpop.f32.mrf.mxu0  ;;  %v2165_v12 = vpop.f32.mrf.mxu1 }
 0x21f   : > { %v2271_v20 = vadd.f32 %v2161_v60, %v4426_v44  ;;  %v1941_v15 = vadd.f32 %v1940_v16, %v4264_v9  ;;  %v4442_v9 = vld [vmem:[%s4561_s2 + $0x70] sm:$0xff] }
 0x220   : > { %v1942_v21 = vpop.f32.mrf.mxu0  ;;  %v2167_v25 = vpop.f32.mrf.mxu1 }
 0x221   : > { %2303 = vst [vmem:[%s4338_s29 + $0x60] sm:$0xff] %v2271_v20  ;;  %v2166_v48 = vadd.f32 %v2165_v12, %v1941_v15 }
 0x222   : > { %v1945_v35 = vpop.f32.mrf.mxu0  ;;  %v2170_v50 = vpop.f32.mrf.mxu1 }
 0x223   : > { %v2272_v53 = vadd.f32 %v2166_v48, %v4434_v57  ;;  %v1946_v47 = vadd.f32 %v1945_v35, %v4278_v24  ;;  %v4450_v24 = vld [vmem:[%s4561_s2 + $0x78] sm:$0xff] }
 0x224   : > { %v1947_v59 = vpop.f32.mrf.mxu0  ;;  %v2172_v62 = vpop.f32.mrf.mxu1 }
 0x225   : > { %2304 = vst [vmem:[%s4338_s29 + $0x68] sm:$0xff] %v2272_v53  ;;  %v2171_v29 = vadd.f32 %v2170_v50, %v1946_v47 }
 0x226   : > { %v1950_v38 = vpop.f32.mrf.mxu0  ;;  %v2175_v52 = vpop.f32.mrf.mxu1 }
 0x227   : > { %v2273_v43 = vadd.f32 %v2171_v29, %v4442_v9  ;;  %v1951_v13 = vadd.f32 %v1950_v38, %v4288_v34 }
 0x228   : > { %v1952_v56 = vpop.f32.mrf.mxu0  ;;  %v2177_v51 = vpop.f32.mrf.mxu1 }
 0x229   : > { %2305 = vst [vmem:[%s4338_s29 + $0x70] sm:$0xff] %v2273_v43  ;;  %v2176_v61 = vadd.f32 %v2175_v52, %v1951_v13 }
 0x22a   : > { %v1955_v23 = vpop.f32.mrf.mxu0  ;;  %v2180_v26 = vpop.f32.mrf.mxu1 }
 0x22b   : > { %v2274_v2 = vadd.f32 %v2176_v61, %v4450_v24  ;;  %v1956_v42 = vadd.f32 %v1955_v23, %v4290_v58 }
 0x22c   : > { %v1957_v1 = vpop.f32.mrf.mxu0  ;;  %v2182_v36 = vpop.f32.mrf.mxu1 }
 0x22d   : > { %2306 = vst [vmem:[%s4338_s29 + $0x78] sm:$0xff] %v2274_v2  ;;  %v2181_v34 = vadd.f32 %v2180_v26, %v1956_v42 }
 0x22e   : > { %v1960_v40 = vpop.f32.mrf.mxu0  ;;  %v2185_v11 = vpop.f32.mrf.mxu1 }
 0x22f   : > { %v2275_v54 = vadd.f32 %v2181_v34, %v4329_v30  ;;  %v1961_v60 = vadd.f32 %v1960_v40, %v4292_v4 }
 0x230   : > { %v1962_v16 = vpop.f32.mrf.mxu0  ;;  %v2187_v12 = vpop.f32.mrf.mxu1 }
 0x231   : > { %2307 = vst [vmem:[%s4338_s29 + $0x80] sm:$0xff] %v2275_v54  ;;  %v2186_v20 = vadd.f32 %v2185_v11, %v1961_v60 }
 0x232   : > { %v1965_v15 = vpop.f32.mrf.mxu0  ;;  %v2190_v21 = vpop.f32.mrf.mxu1 }
 0x233   : > { %v2276_v58 = vadd.f32 %v2186_v20, %v4336_v39  ;;  %v1966_v25 = vadd.f32 %v1965_v15, %v4294_v8 }
 0x234   : > { %v1967_v48 = vpop.f32.mrf.mxu0  ;;  %v2192_v35 = vpop.f32.mrf.mxu1 }
 0x235   : > { %2308 = vst [vmem:[%s4338_s29 + $0x88] sm:$0xff] %v2276_v58  ;;  %v2191_v50 = vadd.f32 %v2190_v21, %v1966_v25 }
 0x236   : > { %v1970_v53 = vpop.f32.mrf.mxu0  ;;  %v2195_v30 = vpop.f32.mrf.mxu1 }
 0x237   : > { %v2277_v4 = vadd.f32 %v2191_v50, %v4346_v14  ;;  %v1971_v47 = vadd.f32 %v1970_v53, %v4296_v17 }
 0x238   : > { %v1972_v59 = vpop.f32.mrf.mxu0  ;;  %v2197_v62 = vpop.f32.mrf.mxu1 }
 0x239   : > { %2309 = vst [vmem:[%s4338_s29 + $0x90] sm:$0xff] %v2277_v4  ;;  %v2196_v29 = vadd.f32 %v2195_v30, %v1971_v47 }
 0x23a   : > { %v1975_v38 = vpop.f32.mrf.mxu0  ;;  %v2200_v39 = vpop.f32.mrf.mxu1 }
 0x23b   : > { %v2278_v8 = vadd.f32 %v2196_v29, %v4354_v3  ;;  %v1976_v52 = vadd.f32 %v1975_v38, %v4298_v31 }
 0x23c   : > { %v1977_v43 = vpop.f32.mrf.mxu0  ;;  %v2202_v13 = vpop.f32.mrf.mxu1 }
 0x23d   : > { %2310 = vst [vmem:[%s4338_s29 + $0x98] sm:$0xff] %v2278_v8  ;;  %v2201_v56 = vadd.f32 %v2200_v39, %v1976_v52 }
 0x23e   : > { %v1980_v51 = vpop.f32.mrf.mxu0  ;;  %v2205_v14 = vpop.f32.mrf.mxu1 }
 0x23f   : > { %v2279_v17 = vadd.f32 %v2201_v56, %v4362_v18  ;;  %v1981_v61 = vadd.f32 %v1980_v51, %v4300_v7 }
 0x240   : > { %v1982_v23 = vpop.f32.mrf.mxu0  ;;  %v2207_v26 = vpop.f32.mrf.mxu1 }
 0x241   : > { %2311 = vst [vmem:[%s4338_s29 + $0xa0] sm:$0xff] %v2279_v17  ;;  %v2206_v2 = vadd.f32 %v2205_v14, %v1981_v61 }
 0x242   : > { %v1985_v42 = vpop.f32.mrf.mxu0  ;;  %v2210_v3 = vpop.f32.mrf.mxu1 }
 0x243   : > { %v2280_v31 = vadd.f32 %v2206_v2, %v4370_v33  ;;  %v1986_v1 = vadd.f32 %v1985_v42, %v4302_v49 }
 0x244   : > { %v1987_v36 = vpop.f32.mrf.mxu0  ;;  %v2212_v34 = vpop.f32.mrf.mxu1 }
 0x245   : > { %2312 = vst [vmem:[%s4338_s29 + $0xa8] sm:$0xff] %v2280_v31  ;;  %v2211_v40 = vadd.f32 %v2210_v3, %v1986_v1 }
 0x246   : > { %v1990_v11 = vpop.f32.mrf.mxu0  ;;  %v2215_v18 = vpop.f32.mrf.mxu1 }
 0x247   : > { %v2281_v7 = vadd.f32 %v2211_v40, %v4378_v55  ;;  %v1991_v54 = vadd.f32 %v1990_v11, %v4304_v6 }
 0x248   : > { %v1992_v60 = vpop.f32.mrf.mxu0  ;;  %v2217_v16 = vpop.f32.mrf.mxu1 }
 0x249   : > { %2313 = vst [vmem:[%s4338_s29 + $0xb0] sm:$0xff] %v2281_v7  ;;  %v2216_v12 = vadd.f32 %v2215_v18, %v1991_v54 }
 0x24a   : > { %v1995_v20 = vpop.f32.mrf.mxu0  ;;  %v2220_v33 = vpop.f32.mrf.mxu1 }
 0x24b   : > { %v2282_v49 = vadd.f32 %v2216_v12, %v4386_v0  ;;  %v1996_v15 = vadd.f32 %v1995_v20, %v4306_v27 }
 0x24c   : > { %v1997_v21 = vpop.f32.mrf.mxu0  ;;  %v2222_v58 = vpop.f32.mrf.mxu1 }
 0x24d   : > { %2314 = vst [vmem:[%s4338_s29 + $0xb8] sm:$0xff] %v2282_v49  ;;  %v2221_v25 = vadd.f32 %v2220_v33, %v1996_v15 }
 0x24e   : > { %v2000_v48 = vpop.f32.mrf.mxu0  ;;  %v2225_v55 = vpop.f32.mrf.mxu1 }
 0x24f   : > { %v2283_v6 = vadd.f32 %v2221_v25, %v4394_v10  ;;  %v2001_v35 = vadd.f32 %v2000_v48, %v4308_v41 }
 0x250   : > { %v2002_v50 = vpop.f32.mrf.mxu0  ;;  %v2227_v53 = vpop.f32.mrf.mxu1 }
 0x251   : > { %2315 = vst [vmem:[%s4338_s29 + $0xc0] sm:$0xff] %v2283_v6  ;;  %v2226_v30 = vadd.f32 %v2225_v55, %v2001_v35 }
 0x252   : > { %v2005_v4 = vpop.f32.mrf.mxu0  ;;  %v2230_v0 = vpop.f32.mrf.mxu1 }
 0x253   : > { %v2284_v27 = vadd.f32 %v2226_v30, %v4402_v19  ;;  %v2006_v47 = vadd.f32 %v2005_v4, %v4310_v37 }
 0x254   : > { %v2007_v59 = vpop.f32.mrf.mxu0  ;;  %v2232_v62 = vpop.f32.mrf.mxu1 }
 0x255   : > { %2316 = vst [vmem:[%s4338_s29 + $0xc8] sm:$0xff] %v2284_v27  ;;  %v2231_v29 = vadd.f32 %v2230_v0, %v2006_v47 }
 0x256   : > { %v2010_v38 = vpop.f32.mrf.mxu0  ;;  %v2235_v10 = vpop.f32.mrf.mxu1 }
 0x257   : > { %v2285_v41 = vadd.f32 %v2231_v29, %v4410_v28  ;;  %v2011_v39 = vadd.f32 %v2010_v38, %v4312_v5 }
 0x258   : > { %v2012_v8 = vpop.f32.mrf.mxu0  ;;  %v2237_v52 = vpop.f32.mrf.mxu1 }
 0x259   : > { %2317 = vst [vmem:[%s4338_s29 + $0xd0] sm:$0xff] %v2285_v41  ;;  %v2236_v43 = vadd.f32 %v2235_v10, %v2011_v39 }
 0x25a   : > { %v2015_v13 = vpop.f32.mrf.mxu0  ;;  %v2240_v19 = vpop.f32.mrf.mxu1 }
 0x25b   : > { %v2286_v37 = vadd.f32 %v2236_v43, %v4418_v46  ;;  %v2016_v56 = vadd.f32 %v2015_v13, %v4314_v22 }
 0x25c   : > { %v2017_v51 = vpop.f32.mrf.mxu0  ;;  %v2242_v14 = vpop.f32.mrf.mxu1 }
 0x25d   : > { %2318 = vst [vmem:[%s4338_s29 + $0xd8] sm:$0xff] %v2286_v37  ;;  %v2241_v17 = vadd.f32 %v2240_v19, %v2016_v56 }
 0x25e   : > { %v2020_v61 = vpop.f32.mrf.mxu0  ;;  %v2245_v28 = vpop.f32.mrf.mxu1 }
 0x25f   : > { %v2287_v5 = vadd.f32 %v2241_v17, %v4426_v44  ;;  %v2021_v23 = vadd.f32 %v2020_v61, %v4316_v32 }
 0x260   : > { %v2022_v26 = vpop.f32.mrf.mxu0  ;;  %v2247_v2 = vpop.f32.mrf.mxu1 }
 0x261   : > { %2319 = vst [vmem:[%s4338_s29 + $0xe0] sm:$0xff] %v2287_v5  ;;  %v2246_v42 = vadd.f32 %v2245_v28, %v2021_v23 }
 0x262   : > { %v2025_v46 = vpop.f32.mrf.mxu0  ;;  %v2250_v22 = vpop.f32.mrf.mxu1 }
 0x263   : > { %v2288_v3 = vadd.f32 %v2246_v42, %v4434_v57  ;;  %v2026_v31 = vadd.f32 %v2025_v46, %v4318_v45 }
 0x264   : > { %v2027_v1 = vpop.f32.mrf.mxu0  ;;  %v2252_v36 = vpop.f32.mrf.mxu1 }
 0x265   : > { %2320 = vst [vmem:[%s4338_s29 + $0xe8] sm:$0xff] %v2288_v3  ;;  %v2251_v44 = vadd.f32 %v2250_v22, %v2026_v31 }
 0x266   : > { %v2030_v32 = vpop.f32.mrf.mxu0  ;;  %v2255_v34 = vpop.f32.mrf.mxu1 }
 0x267   : > { %v2289_v40 = vadd.f32 %v2251_v44, %v4442_v9  ;;  %v2031_v11 = vadd.f32 %v2030_v32, %v4320_v63 }
 0x268   : > { %v2032_v18 = vpop.f32.mrf.mxu0  ;;  %v2257_v7 = vpop.f32.mrf.mxu1 }
 0x269   : > { %2321 = vst [vmem:[%s4338_s29 + $0xf0] sm:$0xff] %v2289_v40  ;;  %v2256_v57 = vadd.f32 %v2255_v34, %v2031_v11 }
 0x26b   : > { %v2290_v45 = vadd.f32 %v2256_v57, %v4450_v24 }
 0x26d   : > { %2322 = vst [vmem:[%s4338_s29 + $0xf8] sm:$0xff] %v2290_v45 }
 0x26e   : > { %3063 = shalt.err (!%p3060_p3)
}
 0x26f   : > { %s3064_s19 = scalar_lea.hbm %s4506_s5, 4096  ;;  %s3068_s11 = scalar_lea.hbm %s4562_s3, 8192 }
 0x270   : > { %p3065_p5 = scmp.ne.s32.totalorder %s4506_s5, %s3064_s19  ;;  %p3069_p9 = scmp.lt.s32.totalorder %s4506_s5, %s4562_s3 }
 0x271   : > { %p3070_p12 = scmp.lt.s32.totalorder %s3068_s11, %s3064_s19 }
 0x272   : > { %p3066_p6 = pnand %p3065_p5, %p3201_p4 }
 0x273   : > { %p3071_p10 = por %p3070_p12, %p3069_p9 }
 0x274   : > { %p3067_p7 = pneg %p3066_p6 }
 0x276   : > { %p3072_p11 = pnand %p3071_p10, %p3067_p7 }
 0x278   : > { %3075 = shalt.err (!%p3072_p11)
}
 0x279   : > { %s3139_s23 = smov 128   ;;  %s3140_s26 = smov 8  }
 0x27a   : > { %2953 = dma.vmem_to_hbm [thread:$0]  (%p3201_p4), %s4508_s28, 4096, %s4506_s5, %s4514_s15, %s3139_s23, %s3139_s23, %s3140_s26  }
 0x27b PF: > { %p2965_p13 = scmp.ge.s32.totalorder %s3130_s17, 2  ;;  %s2352_s27 = sand.u32 1, %s3110_s12  }
 0x27c   : > { %s2353_s30 = scalar_lea.sflag [#allocation4], %s2352_s27 }
 0x27d   : > { %p2960_p0 = pnand %p2965_p13, %p3208_p8 }
 0x27f   : > { %p2961_p1 = pneg %p2960_p0 }
 0x281   : > { %3105 = dma.done.wait (%p2961_p1), %s2353_s30, 4096  }
 0x282   : > { %3107 = vsyncadd (%p2961_p1), %s2353_s30, 4294963200  ;;  %s17_s17 = sadd.s32 1, %s3130_s17   ;;  %s4567_s12 = smov %s3114_s13 }
 0x283   : > { %p14_p2 = scmp.ge.s32.totalorder %s17_s17, 4   ;;  %s4568_s13 = smov %s3118_s14 }
 0x284   : > { %s4569_s14 = smov %s3214_s25  ;;  %s4570_s15 = smov %s3126_s16 }
 0x285   : > { %s4571_s16 = smov %s4573_s20  ;;  %16 = sbr.rel (!%p14_p2) target bundleno = 5 (0x5), region = 77 }
 0x28a   :  { %2358 = vsyncpa [#allocation3], 1 }
 0x28b   :  { %2360 = vsyncpa [#allocation3 + $0x1], 1 }
 0x28c   :  { %2361 = vsyncpa [#allocation4], 1 }
 0x28d   :  { %2363 = vsyncpa [#allocation4 + $0x1], 1 }

</bundles_post_ra>
